<compile_context>
chip_gen: v6e
topology: v6e:2x2x1
jax: 0.10.0
libtpu: 0.0.40
codegen_flags: <defaults>
</compile_context>

<pallas_src>
import jax
import jax.numpy as jnp
from jax.experimental import pallas as pl
from jax.experimental.pallas import tpu as pltpu


def _round_up(x, m):
    return (x + m - 1) // m * m


# ----------------------------------------------------------------------------
# Pallas kernel: full forward pass for one batch tile (3 convs + relu, fc1, fc2)
# ----------------------------------------------------------------------------
def cnn_single_kernel(x_ref,              # (3, TB, 17)   f32 [spatial row, batch, cin]
                      w1_ref, b1_ref,     # (3, 17, 163)  bf16, (1, 163) f32
                      w2_ref, b2_ref,     # (3, 163, 162) bf16, (1, 162) f32
                      w3_ref, b3_ref,     # (3, 162, 235) bf16, (1, 235) f32
                      fw1_ref, fb1_ref,   # (3, 235, 256) bf16, (1, 256) f32
                      fw2_ref, fb2_ref,   # (256, 128)    bf16, (1, 128) f32
                      o_ref):             # (TB, 128) f32
    f32 = jnp.float32
    cdt = w1_ref.dtype                    # matmul compute dtype (bf16)

    def mm(a, w):
        return jnp.dot(a, w, preferred_element_type=f32)

    def conv_layer(h0, h1, h2, w_ref, b_ref):
        # Conv2d(k=3, pad=1) on the 3x1 spatial grid; input width 1 + pad 1
        # means only kernel column kw=1 touches data, so output row i is
        #   sum_kh  h[i + kh - 1] @ wk[kh]   (zero-padded at the ends).
        wk0, wk1, wk2 = w_ref[0], w_ref[1], w_ref[2]
        b = b_ref[...]
        y0 = mm(h0, wk1) + mm(h1, wk2)                  # top row (top pad)
        y1 = mm(h0, wk0) + mm(h1, wk1) + mm(h2, wk2)    # middle row
        y2 = mm(h1, wk0) + mm(h2, wk1)                  # bottom row (bottom pad)
        act = lambda y: jnp.maximum(y + b, 0.0).astype(cdt)   # bias+ReLU in f32
        return act(y0), act(y1), act(y2)

    h0 = x_ref[0].astype(cdt)
    h1 = x_ref[1].astype(cdt)
    h2 = x_ref[2].astype(cdt)

    h0, h1, h2 = conv_layer(h0, h1, h2, w1_ref, b1_ref)   # (TB, 163) x3
    h0, h1, h2 = conv_layer(h0, h1, h2, w2_ref, b2_ref)   # (TB, 162) x3
    h0, h1, h2 = conv_layer(h0, h1, h2, w3_ref, b3_ref)   # (TB, 235) x3

    # fc1: three K-slab matmuls (torch flatten-order permutation baked into fw1).
    z = jnp.maximum(
        mm(h0, fw1_ref[0]) + mm(h1, fw1_ref[1]) + mm(h2, fw1_ref[2])
        + fb1_ref[...], 0.0).astype(cdt)                   # (TB, 256)

    # fc2: weight lane-padded to 128 -> unmasked, lane-dense store.
    # TODO(synk): for very large B, store the output as bf16 to halve writeback.
    o_ref[...] = mm(z, fw2_ref[...]) + fb2_ref[...]        # (TB, 128) f32


# ----------------------------------------------------------------------------
# One-time weight packing (call at parameter-load time, NOT per forward call)
# ----------------------------------------------------------------------------
def pack_params(params, compute_dtype=jnp.bfloat16):
    (w1, b1, w2, b2, w3, b3, fw1, fb1, fw2, fb2) = params

    def conv_w(w):
        # (Cout, Cin, 3, 3); input width 1 + padding 1 => only kernel column
        # kw=1 touches data.  Pack to (3, Cin, Cout) kh-slabs so the kernel can
        # accumulate per output row without any lane-axis concatenation.
        return jnp.transpose(w[:, :, :, 1], (2, 1, 0))

    kw1, kw2, kw3 = conv_w(w1), conv_w(w2), conv_w(w3)

    # fc1 weight (256, 705): torch flat index = c*3 + h.  Split into three
    # (235, 256) h-slabs: fw1p[h, c, o] = fw1[o, c*3 + h].
    fw1p = jnp.transpose(fw1.T.reshape(235, 3, 256), (1, 0, 2))

    # fc2: pad output lanes 3 -> 128 for a lane-dense kernel writeback.
    fw2p = jnp.zeros((256, 128), jnp.float32).at[:, :3].set(fw2.T)
    fb2p = jnp.zeros((1, 128), jnp.float32).at[:, :3].set(fb2)

    cast = lambda a: jnp.asarray(a, compute_dtype)   # MXU operands -> bf16
    fp32 = lambda a: jnp.asarray(a, jnp.float32)     # biases stay f32
    return (cast(kw1), fp32(b1.reshape(1, -1)),
            cast(kw2), fp32(b2.reshape(1, -1)),
            cast(kw3), fp32(b3.reshape(1, -1)),
            cast(fw1p), fp32(fb1.reshape(1, -1)),
            cast(fw2p), fp32(fb2p))


# ----------------------------------------------------------------------------
# Batch-tile selection (per-generation VMEM cap, >=2 grid steps for megacore)
# ----------------------------------------------------------------------------
def _max_tile_rows():
    # 512 rows on 128 MiB VMEM parts (v5e/v6e), 256 on v7x (64 MiB per TC).
    try:
        vmem = pltpu.get_tpu_info().vmem_capacity_bytes
        return 512 if vmem >= 100 * 1024 * 1024 else 256
    except Exception:
        return 256


def _choose_tb(B):
    if B <= 64:
        return _round_up(max(B, 1), 8)
    max_tb = _max_tile_rows()
    # At least 2 grid steps so v7x megacore can split the batch across both TCs.
    n_steps = max(2, pl.cdiv(B, max_tb))
    return _round_up(pl.cdiv(B, n_steps), 8)


# ----------------------------------------------------------------------------
# Wrapper: batch tiling + pallas_call
# ----------------------------------------------------------------------------
def cnn_single_forward(x, packed):
    """x: (B, 17, 3, 1) float32 (PyTorch NCHW). packed: pack_params(params).
    Returns (B, 3) float32."""
    B = x.shape[0]
    TB = _choose_tb(B)
    B_pad = _round_up(B, TB)
    grid = (B_pad // TB,)

    # (B, 17, 3, 1) -> (3, B_pad, 17): one (batch, Cin) slab per spatial row.
    x_hbc = jnp.transpose(x.reshape(B, 17, 3), (2, 0, 1))
    if B_pad != B:
        x_hbc = jnp.pad(x_hbc, ((0, 0), (0, B_pad - B), (0, 0)))

    (kw1, b1, kw2, b2, kw3, b3, fw1p, fb1, fw2p, fb2p) = packed

    def const3d(i):                       # weights: same block every grid step
        return (0, 0, 0)

    def const2d(i):                       # biases / fc2: same block every step
        return (0, 0)

    in_specs = [
        pl.BlockSpec((3, TB, 17), lambda i: (0, i, 0)),        # x: batch-tiled
        pl.BlockSpec(kw1.shape, const3d), pl.BlockSpec(b1.shape, const2d),
        pl.BlockSpec(kw2.shape, const3d), pl.BlockSpec(b2.shape, const2d),
        pl.BlockSpec(kw3.shape, const3d), pl.BlockSpec(b3.shape, const2d),
        pl.BlockSpec(fw1p.shape, const3d), pl.BlockSpec(fb1.shape, const2d),
        pl.BlockSpec(fw2p.shape, const2d), pl.BlockSpec(fb2p.shape, const2d),
    ]
    out_spec = pl.BlockSpec((TB, 128), lambda i: (i, 0))

    out = pl.pallas_call(
        cnn_single_kernel,
        out_shape=jax.ShapeDtypeStruct((B_pad, 128), jnp.float32),
        grid=grid,
        in_specs=in_specs,
        out_specs=out_spec,
        compiler_params=pltpu.CompilerParams(
            dimension_semantics=("parallel",),        # megacore split on v7x
            vmem_limit_bytes=32 * 1024 * 1024),
    )(x_hbc, kw1, b1, kw2, b2, kw3, b3, fw1p, fb1, fw2p, fb2p)

    # TODO(synk): the padded-lane slice adds one extra XLA copy of the output;
    # acceptable vs. a masked (lane-sparse) in-kernel store.
    return out[:B, :3]


# ----------------------------------------------------------------------------
# Deterministic parameter init (PyTorch shapes; uniform(-1/sqrt(fan_in), ...))
# ----------------------------------------------------------------------------
def init_params(key):
    ks = jax.random.split(key, 10)

    def u(k, shape, fan_in):
        bound = 1.0 / (fan_in ** 0.5)
        return jax.random.uniform(k, shape, jnp.float32, -bound, bound)

    w1 = u(ks[0], (163, 17, 3, 3), 17 * 9)
    b1 = u(ks[1], (163,), 17 * 9)
    w2 = u(ks[2], (162, 163, 3, 3), 163 * 9)
    b2 = u(ks[3], (162,), 163 * 9)
    w3 = u(ks[4], (235, 162, 3, 3), 162 * 9)
    b3 = u(ks[5], (235,), 162 * 9)
    fw1 = u(ks[6], (256, 235 * 3), 235 * 3)
    fb1 = u(ks[7], (256,), 235 * 3)
    fw2 = u(ks[8], (3, 256), 256)
    fb2 = u(ks[9], (3,), 256)
    return (w1, b1, w2, b2, w3, b3, fw1, fb1, fw2, fb2)


# ----------------------------------------------------------------------------
# Pure-JAX reference (mirrors the PyTorch forward exactly, f32 HIGHEST)
# ----------------------------------------------------------------------------
def reference_forward(x, params):
    (w1, b1, w2, b2, w3, b3, fw1, fb1, fw2, fb2) = params

    def conv(h, w, b):
        y = jax.lax.conv_general_dilated(
            h, w, window_strides=(1, 1), padding=((1, 1), (1, 1)),
            dimension_numbers=('NCHW', 'OIHW', 'NCHW'),
            precision=jax.lax.Precision.HIGHEST)
        return jax.nn.relu(y + b[None, :, None, None])

    h = x.reshape(-1, 17, 3, 1)
    h = conv(h, w1, b1)
    h = conv(h, w2, b2)
    h = conv(h, w3, b3)
    h = h.reshape(-1, 235 * 3)
    h = jax.nn.relu(h @ fw1.T + fb1)
    return h @ fw2.T + fb2


if __name__ == "__main__":
    key = jax.random.PRNGKey(0)
    k_x, k_p = jax.random.split(key)

    B = 8
    x = jax.random.normal(k_x, (B, 17, 3, 1), dtype=jnp.float32)
    params = init_params(k_p)

    # Pack (and bf16-cast) weights once, hoisted out of the per-call path.
    packed = jax.block_until_ready(pack_params(params))

    out = jax.block_until_ready(cnn_single_forward(x, packed))
    ref = jax.block_until_ready(reference_forward(x, params))

    assert out.shape == (B, 3), out.shape
    # Tolerance accounts for bf16 MXU operands (f32 accumulation) vs the f32
    # HIGHEST-precision reference.
    err = float(jnp.max(jnp.abs(out - ref)))
    assert jnp.allclose(out, ref, atol=2e-2, rtol=2e-2), f"max abs diff {err}"

    print("KERNEL_OK")
</pallas_src>

<mosaic_0001>
module attributes {stable_mosaic.version = 11 : i64} {
  func.func @cnn_single_kernel(%arg0: i32, %arg1: memref<3x8x17xf32, #tpu.memory_space<vmem>>, %arg2: memref<3x17x163xbf16, #tpu.memory_space<vmem>>, %arg3: memref<1x163xf32, #tpu.memory_space<vmem>>, %arg4: memref<3x163x162xbf16, #tpu.memory_space<vmem>>, %arg5: memref<1x162xf32, #tpu.memory_space<vmem>>, %arg6: memref<3x162x235xbf16, #tpu.memory_space<vmem>>, %arg7: memref<1x235xf32, #tpu.memory_space<vmem>>, %arg8: memref<3x235x256xbf16, #tpu.memory_space<vmem>>, %arg9: memref<1x256xf32, #tpu.memory_space<vmem>>, %arg10: memref<256x128xbf16, #tpu.memory_space<vmem>>, %arg11: memref<1x128xf32, #tpu.memory_space<vmem>>, %arg12: memref<8x128xf32, #tpu.memory_space<vmem>>) attributes {dimension_semantics = [#tpu.dimension_semantics<parallel>], iteration_bounds = array<i64: 1>, scalar_prefetch = 0 : i64, scratch_operands = 0 : i64, tpu.core_type = #tpu.core_type<tc>, window_params = [{transform_indices = @transform_0, window_bounds = array<i64: 3, 8, 17>}, {pipeline_mode = #tpu.pipeline_mode<synchronous>, transform_indices = @transform_1, window_bounds = array<i64: 3, 17, 163>}, {pipeline_mode = #tpu.pipeline_mode<synchronous>, transform_indices = @transform_2, window_bounds = array<i64: 1, 163>}, {pipeline_mode = #tpu.pipeline_mode<synchronous>, transform_indices = @transform_3, window_bounds = array<i64: 3, 163, 162>}, {pipeline_mode = #tpu.pipeline_mode<synchronous>, transform_indices = @transform_4, window_bounds = array<i64: 1, 162>}, {pipeline_mode = #tpu.pipeline_mode<synchronous>, transform_indices = @transform_5, window_bounds = array<i64: 3, 162, 235>}, {pipeline_mode = #tpu.pipeline_mode<synchronous>, transform_indices = @transform_6, window_bounds = array<i64: 1, 235>}, {pipeline_mode = #tpu.pipeline_mode<synchronous>, transform_indices = @transform_7, window_bounds = array<i64: 3, 235, 256>}, {pipeline_mode = #tpu.pipeline_mode<synchronous>, transform_indices = @transform_8, window_bounds = array<i64: 1, 256>}, {pipeline_mode = #tpu.pipeline_mode<synchronous>, transform_indices = @transform_9, window_bounds = array<i64: 256, 128>}, {pipeline_mode = #tpu.pipeline_mode<synchronous>, transform_indices = @transform_10, window_bounds = array<i64: 1, 128>}, {transform_indices = @transform_11, window_bounds = array<i64: 8, 128>}]} {
    %c0 = arith.constant 0 : index
    %c0_0 = arith.constant 0 : index
    %c0_1 = arith.constant 0 : index
    %0 = vector.load %arg1[%c0, %c0_0, %c0_1] : memref<3x8x17xf32, #tpu.memory_space<vmem>>, vector<1x8x17xf32>
    %1 = vector.shape_cast %0 : vector<1x8x17xf32> to vector<8x17xf32>
    %2 = arith.truncf %1 : vector<8x17xf32> to vector<8x17xbf16>
    %c1 = arith.constant 1 : index
    %c0_2 = arith.constant 0 : index
    %c0_3 = arith.constant 0 : index
    %3 = vector.load %arg1[%c1, %c0_2, %c0_3] : memref<3x8x17xf32, #tpu.memory_space<vmem>>, vector<1x8x17xf32>
    %4 = vector.shape_cast %3 : vector<1x8x17xf32> to vector<8x17xf32>
    %5 = arith.truncf %4 : vector<8x17xf32> to vector<8x17xbf16>
    %c2 = arith.constant 2 : index
    %c0_4 = arith.constant 0 : index
    %c0_5 = arith.constant 0 : index
    %6 = vector.load %arg1[%c2, %c0_4, %c0_5] : memref<3x8x17xf32, #tpu.memory_space<vmem>>, vector<1x8x17xf32>
    %7 = vector.shape_cast %6 : vector<1x8x17xf32> to vector<8x17xf32>
    %8 = arith.truncf %7 : vector<8x17xf32> to vector<8x17xbf16>
    %c0_6 = arith.constant 0 : index
    %c0_7 = arith.constant 0 : index
    %c0_8 = arith.constant 0 : index
    %9 = vector.load %arg2[%c0_6, %c0_7, %c0_8] : memref<3x17x163xbf16, #tpu.memory_space<vmem>>, vector<1x17x163xbf16>
    %10 = vector.shape_cast %9 : vector<1x17x163xbf16> to vector<17x163xbf16>
    %c1_9 = arith.constant 1 : index
    %c0_10 = arith.constant 0 : index
    %c0_11 = arith.constant 0 : index
    %11 = vector.load %arg2[%c1_9, %c0_10, %c0_11] : memref<3x17x163xbf16, #tpu.memory_space<vmem>>, vector<1x17x163xbf16>
    %12 = vector.shape_cast %11 : vector<1x17x163xbf16> to vector<17x163xbf16>
    %c2_12 = arith.constant 2 : index
    %c0_13 = arith.constant 0 : index
    %c0_14 = arith.constant 0 : index
    %13 = vector.load %arg2[%c2_12, %c0_13, %c0_14] : memref<3x17x163xbf16, #tpu.memory_space<vmem>>, vector<1x17x163xbf16>
    %14 = vector.shape_cast %13 : vector<1x17x163xbf16> to vector<17x163xbf16>
    %c0_15 = arith.constant 0 : index
    %c0_16 = arith.constant 0 : index
    %15 = vector.load %arg3[%c0_15, %c0_16] : memref<1x163xf32, #tpu.memory_space<vmem>>, vector<1x163xf32>
    %cst = arith.constant dense<0.000000e+00> : vector<8x163xf32>
    %16 = tpu.matmul %2, %12, %cst {dimension_numbers = #tpu.dot_dimension_numbers<[1], [0], [0], [1], [0, 0, 1, 1], [], []>} : vector<8x17xbf16>, vector<17x163xbf16>, vector<8x163xf32> -> vector<8x163xf32>
    %cst_17 = arith.constant dense<0.000000e+00> : vector<8x163xf32>
    %17 = tpu.matmul %5, %14, %cst_17 {dimension_numbers = #tpu.dot_dimension_numbers<[1], [0], [0], [1], [0, 0, 1, 1], [], []>} : vector<8x17xbf16>, vector<17x163xbf16>, vector<8x163xf32> -> vector<8x163xf32>
    %18 = arith.addf %16, %17 : vector<8x163xf32>
    %cst_18 = arith.constant dense<0.000000e+00> : vector<8x163xf32>
    %19 = tpu.matmul %2, %10, %cst_18 {dimension_numbers = #tpu.dot_dimension_numbers<[1], [0], [0], [1], [0, 0, 1, 1], [], []>} : vector<8x17xbf16>, vector<17x163xbf16>, vector<8x163xf32> -> vector<8x163xf32>
    %cst_19 = arith.constant dense<0.000000e+00> : vector<8x163xf32>
    %20 = tpu.matmul %5, %12, %cst_19 {dimension_numbers = #tpu.dot_dimension_numbers<[1], [0], [0], [1], [0, 0, 1, 1], [], []>} : vector<8x17xbf16>, vector<17x163xbf16>, vector<8x163xf32> -> vector<8x163xf32>
    %21 = arith.addf %19, %20 : vector<8x163xf32>
    %cst_20 = arith.constant dense<0.000000e+00> : vector<8x163xf32>
    %22 = tpu.matmul %8, %14, %cst_20 {dimension_numbers = #tpu.dot_dimension_numbers<[1], [0], [0], [1], [0, 0, 1, 1], [], []>} : vector<8x17xbf16>, vector<17x163xbf16>, vector<8x163xf32> -> vector<8x163xf32>
    %23 = arith.addf %21, %22 : vector<8x163xf32>
    %cst_21 = arith.constant dense<0.000000e+00> : vector<8x163xf32>
    %24 = tpu.matmul %5, %10, %cst_21 {dimension_numbers = #tpu.dot_dimension_numbers<[1], [0], [0], [1], [0, 0, 1, 1], [], []>} : vector<8x17xbf16>, vector<17x163xbf16>, vector<8x163xf32> -> vector<8x163xf32>
    %cst_22 = arith.constant dense<0.000000e+00> : vector<8x163xf32>
    %25 = tpu.matmul %8, %12, %cst_22 {dimension_numbers = #tpu.dot_dimension_numbers<[1], [0], [0], [1], [0, 0, 1, 1], [], []>} : vector<8x17xbf16>, vector<17x163xbf16>, vector<8x163xf32> -> vector<8x163xf32>
    %26 = arith.addf %24, %25 : vector<8x163xf32>
    %27 = vector.broadcast %15 : vector<1x163xf32> to vector<8x163xf32>
    %28 = arith.addf %18, %27 : vector<8x163xf32>
    %cst_23 = arith.constant 0.000000e+00 : f32
    %29 = vector.broadcast %cst_23 : f32 to vector<8x163xf32>
    %30 = arith.maximumf %28, %29 : vector<8x163xf32>
    %31 = arith.truncf %30 : vector<8x163xf32> to vector<8x163xbf16>
    %32 = vector.broadcast %15 : vector<1x163xf32> to vector<8x163xf32>
    %33 = arith.addf %23, %32 : vector<8x163xf32>
    %cst_24 = arith.constant 0.000000e+00 : f32
    %34 = vector.broadcast %cst_24 : f32 to vector<8x163xf32>
    %35 = arith.maximumf %33, %34 : vector<8x163xf32>
    %36 = arith.truncf %35 : vector<8x163xf32> to vector<8x163xbf16>
    %37 = vector.broadcast %15 : vector<1x163xf32> to vector<8x163xf32>
    %38 = arith.addf %26, %37 : vector<8x163xf32>
    %cst_25 = arith.constant 0.000000e+00 : f32
    %39 = vector.broadcast %cst_25 : f32 to vector<8x163xf32>
    %40 = arith.maximumf %38, %39 : vector<8x163xf32>
    %41 = arith.truncf %40 : vector<8x163xf32> to vector<8x163xbf16>
    %c0_26 = arith.constant 0 : index
    %c0_27 = arith.constant 0 : index
    %c0_28 = arith.constant 0 : index
    %42 = vector.load %arg4[%c0_26, %c0_27, %c0_28] : memref<3x163x162xbf16, #tpu.memory_space<vmem>>, vector<1x163x162xbf16>
    %43 = vector.shape_cast %42 : vector<1x163x162xbf16> to vector<163x162xbf16>
    %c1_29 = arith.constant 1 : index
    %c0_30 = arith.constant 0 : index
    %c0_31 = arith.constant 0 : index
    %44 = vector.load %arg4[%c1_29, %c0_30, %c0_31] : memref<3x163x162xbf16, #tpu.memory_space<vmem>>, vector<1x163x162xbf16>
    %45 = vector.shape_cast %44 : vector<1x163x162xbf16> to vector<163x162xbf16>
    %c2_32 = arith.constant 2 : index
    %c0_33 = arith.constant 0 : index
    %c0_34 = arith.constant 0 : index
    %46 = vector.load %arg4[%c2_32, %c0_33, %c0_34] : memref<3x163x162xbf16, #tpu.memory_space<vmem>>, vector<1x163x162xbf16>
    %47 = vector.shape_cast %46 : vector<1x163x162xbf16> to vector<163x162xbf16>
    %c0_35 = arith.constant 0 : index
    %c0_36 = arith.constant 0 : index
    %48 = vector.load %arg5[%c0_35, %c0_36] : memref<1x162xf32, #tpu.memory_space<vmem>>, vector<1x162xf32>
    %cst_37 = arith.constant dense<0.000000e+00> : vector<8x162xf32>
    %49 = tpu.matmul %31, %45, %cst_37 {dimension_numbers = #tpu.dot_dimension_numbers<[1], [0], [0], [1], [0, 0, 1, 1], [], []>} : vector<8x163xbf16>, vector<163x162xbf16>, vector<8x162xf32> -> vector<8x162xf32>
    %cst_38 = arith.constant dense<0.000000e+00> : vector<8x162xf32>
    %50 = tpu.matmul %36, %47, %cst_38 {dimension_numbers = #tpu.dot_dimension_numbers<[1], [0], [0], [1], [0, 0, 1, 1], [], []>} : vector<8x163xbf16>, vector<163x162xbf16>, vector<8x162xf32> -> vector<8x162xf32>
    %51 = arith.addf %49, %50 : vector<8x162xf32>
    %cst_39 = arith.constant dense<0.000000e+00> : vector<8x162xf32>
    %52 = tpu.matmul %31, %43, %cst_39 {dimension_numbers = #tpu.dot_dimension_numbers<[1], [0], [0], [1], [0, 0, 1, 1], [], []>} : vector<8x163xbf16>, vector<163x162xbf16>, vector<8x162xf32> -> vector<8x162xf32>
    %cst_40 = arith.constant dense<0.000000e+00> : vector<8x162xf32>
    %53 = tpu.matmul %36, %45, %cst_40 {dimension_numbers = #tpu.dot_dimension_numbers<[1], [0], [0], [1], [0, 0, 1, 1], [], []>} : vector<8x163xbf16>, vector<163x162xbf16>, vector<8x162xf32> -> vector<8x162xf32>
    %54 = arith.addf %52, %53 : vector<8x162xf32>
    %cst_41 = arith.constant dense<0.000000e+00> : vector<8x162xf32>
    %55 = tpu.matmul %41, %47, %cst_41 {dimension_numbers = #tpu.dot_dimension_numbers<[1], [0], [0], [1], [0, 0, 1, 1], [], []>} : vector<8x163xbf16>, vector<163x162xbf16>, vector<8x162xf32> -> vector<8x162xf32>
    %56 = arith.addf %54, %55 : vector<8x162xf32>
    %cst_42 = arith.constant dense<0.000000e+00> : vector<8x162xf32>
    %57 = tpu.matmul %36, %43, %cst_42 {dimension_numbers = #tpu.dot_dimension_numbers<[1], [0], [0], [1], [0, 0, 1, 1], [], []>} : vector<8x163xbf16>, vector<163x162xbf16>, vector<8x162xf32> -> vector<8x162xf32>
    %cst_43 = arith.constant dense<0.000000e+00> : vector<8x162xf32>
    %58 = tpu.matmul %41, %45, %cst_43 {dimension_numbers = #tpu.dot_dimension_numbers<[1], [0], [0], [1], [0, 0, 1, 1], [], []>} : vector<8x163xbf16>, vector<163x162xbf16>, vector<8x162xf32> -> vector<8x162xf32>
    %59 = arith.addf %57, %58 : vector<8x162xf32>
    %60 = vector.broadcast %48 : vector<1x162xf32> to vector<8x162xf32>
    %61 = arith.addf %51, %60 : vector<8x162xf32>
    %cst_44 = arith.constant 0.000000e+00 : f32
    %62 = vector.broadcast %cst_44 : f32 to vector<8x162xf32>
    %63 = arith.maximumf %61, %62 : vector<8x162xf32>
    %64 = arith.truncf %63 : vector<8x162xf32> to vector<8x162xbf16>
    %65 = vector.broadcast %48 : vector<1x162xf32> to vector<8x162xf32>
    %66 = arith.addf %56, %65 : vector<8x162xf32>
    %cst_45 = arith.constant 0.000000e+00 : f32
    %67 = vector.broadcast %cst_45 : f32 to vector<8x162xf32>
    %68 = arith.maximumf %66, %67 : vector<8x162xf32>
    %69 = arith.truncf %68 : vector<8x162xf32> to vector<8x162xbf16>
    %70 = vector.broadcast %48 : vector<1x162xf32> to vector<8x162xf32>
    %71 = arith.addf %59, %70 : vector<8x162xf32>
    %cst_46 = arith.constant 0.000000e+00 : f32
    %72 = vector.broadcast %cst_46 : f32 to vector<8x162xf32>
    %73 = arith.maximumf %71, %72 : vector<8x162xf32>
    %74 = arith.truncf %73 : vector<8x162xf32> to vector<8x162xbf16>
    %c0_47 = arith.constant 0 : index
    %c0_48 = arith.constant 0 : index
    %c0_49 = arith.constant 0 : index
    %75 = vector.load %arg6[%c0_47, %c0_48, %c0_49] : memref<3x162x235xbf16, #tpu.memory_space<vmem>>, vector<1x162x235xbf16>
    %76 = vector.shape_cast %75 : vector<1x162x235xbf16> to vector<162x235xbf16>
    %c1_50 = arith.constant 1 : index
    %c0_51 = arith.constant 0 : index
    %c0_52 = arith.constant 0 : index
    %77 = vector.load %arg6[%c1_50, %c0_51, %c0_52] : memref<3x162x235xbf16, #tpu.memory_space<vmem>>, vector<1x162x235xbf16>
    %78 = vector.shape_cast %77 : vector<1x162x235xbf16> to vector<162x235xbf16>
    %c2_53 = arith.constant 2 : index
    %c0_54 = arith.constant 0 : index
    %c0_55 = arith.constant 0 : index
    %79 = vector.load %arg6[%c2_53, %c0_54, %c0_55] : memref<3x162x235xbf16, #tpu.memory_space<vmem>>, vector<1x162x235xbf16>
    %80 = vector.shape_cast %79 : vector<1x162x235xbf16> to vector<162x235xbf16>
    %c0_56 = arith.constant 0 : index
    %c0_57 = arith.constant 0 : index
    %81 = vector.load %arg7[%c0_56, %c0_57] : memref<1x235xf32, #tpu.memory_space<vmem>>, vector<1x235xf32>
    %cst_58 = arith.constant dense<0.000000e+00> : vector<8x235xf32>
    %82 = tpu.matmul %64, %78, %cst_58 {dimension_numbers = #tpu.dot_dimension_numbers<[1], [0], [0], [1], [0, 0, 1, 1], [], []>} : vector<8x162xbf16>, vector<162x235xbf16>, vector<8x235xf32> -> vector<8x235xf32>
    %cst_59 = arith.constant dense<0.000000e+00> : vector<8x235xf32>
    %83 = tpu.matmul %69, %80, %cst_59 {dimension_numbers = #tpu.dot_dimension_numbers<[1], [0], [0], [1], [0, 0, 1, 1], [], []>} : vector<8x162xbf16>, vector<162x235xbf16>, vector<8x235xf32> -> vector<8x235xf32>
    %84 = arith.addf %82, %83 : vector<8x235xf32>
    %cst_60 = arith.constant dense<0.000000e+00> : vector<8x235xf32>
    %85 = tpu.matmul %64, %76, %cst_60 {dimension_numbers = #tpu.dot_dimension_numbers<[1], [0], [0], [1], [0, 0, 1, 1], [], []>} : vector<8x162xbf16>, vector<162x235xbf16>, vector<8x235xf32> -> vector<8x235xf32>
    %cst_61 = arith.constant dense<0.000000e+00> : vector<8x235xf32>
    %86 = tpu.matmul %69, %78, %cst_61 {dimension_numbers = #tpu.dot_dimension_numbers<[1], [0], [0], [1], [0, 0, 1, 1], [], []>} : vector<8x162xbf16>, vector<162x235xbf16>, vector<8x235xf32> -> vector<8x235xf32>
    %87 = arith.addf %85, %86 : vector<8x235xf32>
    %cst_62 = arith.constant dense<0.000000e+00> : vector<8x235xf32>
    %88 = tpu.matmul %74, %80, %cst_62 {dimension_numbers = #tpu.dot_dimension_numbers<[1], [0], [0], [1], [0, 0, 1, 1], [], []>} : vector<8x162xbf16>, vector<162x235xbf16>, vector<8x235xf32> -> vector<8x235xf32>
    %89 = arith.addf %87, %88 : vector<8x235xf32>
    %cst_63 = arith.constant dense<0.000000e+00> : vector<8x235xf32>
    %90 = tpu.matmul %69, %76, %cst_63 {dimension_numbers = #tpu.dot_dimension_numbers<[1], [0], [0], [1], [0, 0, 1, 1], [], []>} : vector<8x162xbf16>, vector<162x235xbf16>, vector<8x235xf32> -> vector<8x235xf32>
    %cst_64 = arith.constant dense<0.000000e+00> : vector<8x235xf32>
    %91 = tpu.matmul %74, %78, %cst_64 {dimension_numbers = #tpu.dot_dimension_numbers<[1], [0], [0], [1], [0, 0, 1, 1], [], []>} : vector<8x162xbf16>, vector<162x235xbf16>, vector<8x235xf32> -> vector<8x235xf32>
    %92 = arith.addf %90, %91 : vector<8x235xf32>
    %93 = vector.broadcast %81 : vector<1x235xf32> to vector<8x235xf32>
    %94 = arith.addf %84, %93 : vector<8x235xf32>
    %cst_65 = arith.constant 0.000000e+00 : f32
    %95 = vector.broadcast %cst_65 : f32 to vector<8x235xf32>
    %96 = arith.maximumf %94, %95 : vector<8x235xf32>
    %97 = arith.truncf %96 : vector<8x235xf32> to vector<8x235xbf16>
    %98 = vector.broadcast %81 : vector<1x235xf32> to vector<8x235xf32>
    %99 = arith.addf %89, %98 : vector<8x235xf32>
    %cst_66 = arith.constant 0.000000e+00 : f32
    %100 = vector.broadcast %cst_66 : f32 to vector<8x235xf32>
    %101 = arith.maximumf %99, %100 : vector<8x235xf32>
    %102 = arith.truncf %101 : vector<8x235xf32> to vector<8x235xbf16>
    %103 = vector.broadcast %81 : vector<1x235xf32> to vector<8x235xf32>
    %104 = arith.addf %92, %103 : vector<8x235xf32>
    %cst_67 = arith.constant 0.000000e+00 : f32
    %105 = vector.broadcast %cst_67 : f32 to vector<8x235xf32>
    %106 = arith.maximumf %104, %105 : vector<8x235xf32>
    %107 = arith.truncf %106 : vector<8x235xf32> to vector<8x235xbf16>
    %c0_68 = arith.constant 0 : index
    %c0_69 = arith.constant 0 : index
    %c0_70 = arith.constant 0 : index
    %108 = vector.load %arg8[%c0_68, %c0_69, %c0_70] : memref<3x235x256xbf16, #tpu.memory_space<vmem>>, vector<1x235x256xbf16>
    %109 = vector.shape_cast %108 : vector<1x235x256xbf16> to vector<235x256xbf16>
    %cst_71 = arith.constant dense<0.000000e+00> : vector<8x256xf32>
    %110 = tpu.matmul %97, %109, %cst_71 {dimension_numbers = #tpu.dot_dimension_numbers<[1], [0], [0], [1], [0, 0, 1, 1], [], []>} : vector<8x235xbf16>, vector<235x256xbf16>, vector<8x256xf32> -> vector<8x256xf32>
    %c1_72 = arith.constant 1 : index
    %c0_73 = arith.constant 0 : index
    %c0_74 = arith.constant 0 : index
    %111 = vector.load %arg8[%c1_72, %c0_73, %c0_74] : memref<3x235x256xbf16, #tpu.memory_space<vmem>>, vector<1x235x256xbf16>
    %112 = vector.shape_cast %111 : vector<1x235x256xbf16> to vector<235x256xbf16>
    %cst_75 = arith.constant dense<0.000000e+00> : vector<8x256xf32>
    %113 = tpu.matmul %102, %112, %cst_75 {dimension_numbers = #tpu.dot_dimension_numbers<[1], [0], [0], [1], [0, 0, 1, 1], [], []>} : vector<8x235xbf16>, vector<235x256xbf16>, vector<8x256xf32> -> vector<8x256xf32>
    %114 = arith.addf %110, %113 : vector<8x256xf32>
    %c2_76 = arith.constant 2 : index
    %c0_77 = arith.constant 0 : index
    %c0_78 = arith.constant 0 : index
    %115 = vector.load %arg8[%c2_76, %c0_77, %c0_78] : memref<3x235x256xbf16, #tpu.memory_space<vmem>>, vector<1x235x256xbf16>
    %116 = vector.shape_cast %115 : vector<1x235x256xbf16> to vector<235x256xbf16>
    %cst_79 = arith.constant dense<0.000000e+00> : vector<8x256xf32>
    %117 = tpu.matmul %107, %116, %cst_79 {dimension_numbers = #tpu.dot_dimension_numbers<[1], [0], [0], [1], [0, 0, 1, 1], [], []>} : vector<8x235xbf16>, vector<235x256xbf16>, vector<8x256xf32> -> vector<8x256xf32>
    %118 = arith.addf %114, %117 : vector<8x256xf32>
    %c0_80 = arith.constant 0 : index
    %c0_81 = arith.constant 0 : index
    %119 = vector.load %arg9[%c0_80, %c0_81] : memref<1x256xf32, #tpu.memory_space<vmem>>, vector<1x256xf32>
    %120 = vector.broadcast %119 : vector<1x256xf32> to vector<8x256xf32>
    %121 = arith.addf %118, %120 : vector<8x256xf32>
    %cst_82 = arith.constant 0.000000e+00 : f32
    %122 = vector.broadcast %cst_82 : f32 to vector<8x256xf32>
    %123 = arith.maximumf %121, %122 : vector<8x256xf32>
    %124 = arith.truncf %123 : vector<8x256xf32> to vector<8x256xbf16>
    %c0_83 = arith.constant 0 : index
    %c0_84 = arith.constant 0 : index
    %125 = vector.load %arg10[%c0_83, %c0_84] : memref<256x128xbf16, #tpu.memory_space<vmem>>, vector<256x128xbf16>
    %cst_85 = arith.constant dense<0.000000e+00> : vector<8x128xf32>
    %126 = tpu.matmul %124, %125, %cst_85 {dimension_numbers = #tpu.dot_dimension_numbers<[1], [0], [0], [1], [0, 0, 1, 1], [], []>} : vector<8x256xbf16>, vector<256x128xbf16>, vector<8x128xf32> -> vector<8x128xf32>
    %c0_86 = arith.constant 0 : index
    %c0_87 = arith.constant 0 : index
    %127 = vector.load %arg11[%c0_86, %c0_87] : memref<1x128xf32, #tpu.memory_space<vmem>>, vector<1x128xf32>
    %128 = vector.broadcast %127 : vector<1x128xf32> to vector<8x128xf32>
    %129 = arith.addf %126, %128 : vector<8x128xf32>
    %c0_88 = arith.constant 0 : index
    %c0_89 = arith.constant 0 : index
    %130 = vector.load %arg12[%c0_88, %c0_89] : memref<8x128xf32, #tpu.memory_space<vmem>>, vector<8x128xf32>
    tpu.vector_store %arg12[%c0_88, %c0_89], %129 {strides = array<i32>} : memref<8x128xf32, #tpu.memory_space<vmem>>, vector<8x128xf32>,
    return
  }
  func.func @transform_0(%arg0: i32) -> (i32, i32, i32) {
    %c0_i32 = arith.constant 0 : i32
    %c0_i32_0 = arith.constant 0 : i32
    %c0_i32_1 = arith.constant 0 : i32
    return %c0_i32, %arg0, %c0_i32_0 : i32, i32, i32
  }
  func.func @transform_1(%arg0: i32) -> (i32, i32, i32) {
    %c0_i32 = arith.constant 0 : i32
    %c0_i32_0 = arith.constant 0 : i32
    %c0_i32_1 = arith.constant 0 : i32
    %c0_i32_2 = arith.constant 0 : i32
    return %c0_i32, %c0_i32_0, %c0_i32_1 : i32, i32, i32
  }
  func.func @transform_2(%arg0: i32) -> (i32, i32) {
    %c0_i32 = arith.constant 0 : i32
    %c0_i32_0 = arith.constant 0 : i32
    %c0_i32_1 = arith.constant 0 : i32
    return %c0_i32, %c0_i32_0 : i32, i32
  }
  func.func @transform_3(%arg0: i32) -> (i32, i32, i32) {
    %c0_i32 = arith.constant 0 : i32
    %c0_i32_0 = arith.constant 0 : i32
    %c0_i32_1 = arith.constant 0 : i32
    %c0_i32_2 = arith.constant 0 : i32
    return %c0_i32, %c0_i32_0, %c0_i32_1 : i32, i32, i32
  }
  func.func @transform_4(%arg0: i32) -> (i32, i32) {
    %c0_i32 = arith.constant 0 : i32
    %c0_i32_0 = arith.constant 0 : i32
    %c0_i32_1 = arith.constant 0 : i32
    return %c0_i32, %c0_i32_0 : i32, i32
  }
  func.func @transform_5(%arg0: i32) -> (i32, i32, i32) {
    %c0_i32 = arith.constant 0 : i32
    %c0_i32_0 = arith.constant 0 : i32
    %c0_i32_1 = arith.constant 0 : i32
    %c0_i32_2 = arith.constant 0 : i32
    return %c0_i32, %c0_i32_0, %c0_i32_1 : i32, i32, i32
  }
  func.func @transform_6(%arg0: i32) -> (i32, i32) {
    %c0_i32 = arith.constant 0 : i32
    %c0_i32_0 = arith.constant 0 : i32
    %c0_i32_1 = arith.constant 0 : i32
    return %c0_i32, %c0_i32_0 : i32, i32
  }
  func.func @transform_7(%arg0: i32) -> (i32, i32, i32) {
    %c0_i32 = arith.constant 0 : i32
    %c0_i32_0 = arith.constant 0 : i32
    %c0_i32_1 = arith.constant 0 : i32
    %c0_i32_2 = arith.constant 0 : i32
    return %c0_i32, %c0_i32_0, %c0_i32_1 : i32, i32, i32
  }
  func.func @transform_8(%arg0: i32) -> (i32, i32) {
    %c0_i32 = arith.constant 0 : i32
    %c0_i32_0 = arith.constant 0 : i32
    %c0_i32_1 = arith.constant 0 : i32
    return %c0_i32, %c0_i32_0 : i32, i32
  }
  func.func @transform_9(%arg0: i32) -> (i32, i32) {
    %c0_i32 = arith.constant 0 : i32
    %c0_i32_0 = arith.constant 0 : i32
    %c0_i32_1 = arith.constant 0 : i32
    return %c0_i32, %c0_i32_0 : i32, i32
  }
  func.func @transform_10(%arg0: i32) -> (i32, i32) {
    %c0_i32 = arith.constant 0 : i32
    %c0_i32_0 = arith.constant 0 : i32
    %c0_i32_1 = arith.constant 0 : i32
    return %c0_i32, %c0_i32_0 : i32, i32
  }
  func.func @transform_11(%arg0: i32) -> (i32, i32) {
    %c0_i32 = arith.constant 0 : i32
    %c0_i32_0 = arith.constant 0 : i32
    return %arg0, %c0_i32 : i32, i32
  }
}

</mosaic_0001>

<bundles_post_ra>
// kernel: tpu_custom_call.1
= control target key start
LH: loop header
LB: loop body
LE: loop exit
PB: predicated region body
PF: predicated region fallthrough
CT: control target
= control target key end

     0   :  { %16 = vsyncpa [#allocation3], 0  ;;  %s4597_s0 = inlined_call_operand.vmem [shape: f32[3,8,17], index: 0, kind: input, shape index: {}]   ;;  %s4598_s1 = inlined_call_operand.vmem [shape: bf16[3,17,163], index: 1, kind: input, shape index: {}]   ;;  %s4599_s2 = inlined_call_operand.vmem [shape: f32[1,163], index: 2, kind: input, shape index: {}]   ;;  %s4600_s3 = inlined_call_operand.hbm [shape: bf16[3,163,162], index: 3, kind: input, shape index: {}]   ;;  %s4601_s4 = inlined_call_operand.vmem [shape: f32[1,162], index: 4, kind: input, shape index: {}]   ;;  %s4602_s5 = inlined_call_operand.hbm [shape: bf16[3,162,235], index: 5, kind: input, shape index: {}]   ;;  %s4603_s6 = inlined_call_operand.hbm [shape: f32[1,235], index: 6, kind: input, shape index: {}]   ;;  %s4604_s7 = inlined_call_operand.hbm [shape: bf16[3,235,256], index: 7, kind: input, shape index: {}]   ;;  %s4605_s8 = inlined_call_operand.hbm [shape: f32[1,256], index: 8, kind: input, shape index: {}]   ;;  %s4606_s9 = inlined_call_operand.vmem [shape: bf16[256,128], index: 9, kind: input, shape index: {}]   ;;  %s4607_s10 = inlined_call_operand.vmem [shape: f32[1,128], index: 10, kind: input, shape index: {}]   ;;  %s4608_s11 = inlined_call_operand.hbm [shape: f32[8,128], index: 11, kind: output, shape index: {}]  }
   0x1   :  { %17 = vsyncpa [#allocation6], 0 }
   0x2   :  { %18 = vsyncpa [#allocation9], 0 }
   0x3   :  { %19 = vsyncpa [#allocation4], 0  ;;  %s3687_s17 = smov [#allocation5]   ;;  %s3688_s19 = smov [#allocation8]  }
   0x4   :  { %s45_s18 = sshll.u32 %s3687_s17, 4  ;;  %s67_s20 = sshll.u32 %s3688_s19, 4  ;;  %s46_s18 = int_to_ptr.vmem [resolvable:$true] %s45_s18  ;;  %s68_s20 = int_to_ptr.vmem [resolvable:$true] %s67_s20 }
   0x5   :  { %s3567_s21 = scalar_lea.vmem %s46_s18, 8064  ;;  %p3572_p1 = scmp.lt.s32.totalorder %s46_s18, %s46_s18 }
   0x6   :  { %p3568_p0 = scmp.ne.s32.totalorder %s46_s18, %s3567_s21  ;;  %p3573_p2 = scmp.lt.s32.totalorder %s3567_s21, %s3567_s21 }
   0x8   :  { %p3574_p3 = por %p3573_p2, %p3572_p1 }
   0xa   :  { %p3575_p4 = pnand %p3574_p3, %p3568_p0 }
   0xc   :  { %3578 = shalt.err (!%p3575_p4)
}
   0xd   :  { %s3689_s22 = smov 128   ;;  %s3690_s23 = smov 8  }
   0xe   :  { %51 = dma.hbm_to_vmem [thread:$0]  %s4602_s5, 8064, %s46_s18, [#allocation6], %s3689_s22, %s3689_s22, %s3690_s23  }
   0xf   :  { %s3587_s26 = scalar_lea.vmem %s68_s20, 11520  ;;  %p3592_p6 = scmp.lt.s32.totalorder %s68_s20, %s68_s20 }
  0x10   :  { %p3588_p5 = scmp.ne.s32.totalorder %s68_s20, %s3587_s26  ;;  %p3593_p7 = scmp.lt.s32.totalorder %s3587_s26, %s3587_s26 }
  0x12   :  { %p3594_p8 = por %p3593_p7, %p3592_p6 }
  0x14   :  { %p3595_p9 = pnand %p3594_p8, %p3588_p5 }
  0x16   :  { %3598 = shalt.err (!%p3595_p9)
}
  0x17   :  { %73 = dma.hbm_to_vmem [thread:$0]  %s4604_s7, 11520, %s68_s20, [#allocation9], %s3689_s22, %s3689_s22, %s3690_s23  }
  0x18   :  { %s3691_s29 = smov [#allocation2]   ;;  %s3692_s12 = smov [#allocation7]  }
  0x19   :  { %s31_s30 = sshll.u32 %s3691_s29, 4  ;;  %s58_s13 = sshll.u32 %s3692_s12, 4  ;;  %s32_s30 = int_to_ptr.vmem [resolvable:$true] %s31_s30  ;;  %s59_s13 = int_to_ptr.vmem [resolvable:$true] %s58_s13 }
  0x1a   :  { %s3607_s14 = scalar_lea.vmem %s32_s30, 8064  ;;  %p3612_p11 = scmp.lt.s32.totalorder %s32_s30, %s32_s30 }
  0x1b   :  { %p3608_p10 = scmp.ne.s32.totalorder %s32_s30, %s3607_s14  ;;  %p3613_p12 = scmp.lt.s32.totalorder %s3607_s14, %s3607_s14 }
  0x1d   :  { %p3614_p13 = por %p3613_p12, %p3612_p11 }
  0x1f   :  { %p3615_p0 = pnand %p3614_p13, %p3608_p10 }
  0x21   :  { %3618 = shalt.err (!%p3615_p0)
}
  0x22   :  { %37 = dma.hbm_to_vmem [thread:$0]  %s4600_s3, 8064, %s32_s30, [#allocation3], %s3689_s22, %s3689_s22, %s3690_s23  }
  0x23   :  { %s3627_s16 = scalar_lea.vmem %s59_s13, 32  ;;  %p3632_p2 = scmp.lt.s32.totalorder %s59_s13, %s59_s13 }
  0x24   :  { %p3628_p1 = scmp.ne.s32.totalorder %s59_s13, %s3627_s16  ;;  %p3633_p3 = scmp.lt.s32.totalorder %s3627_s16, %s3627_s16 }
  0x26   :  { %p3634_p4 = por %p3633_p3, %p3632_p2 }
  0x28   :  { %p3635_p5 = pnand %p3634_p4, %p3628_p1 }
  0x2a   :  { %3638 = shalt.err (!%p3635_p5)
}
  0x2b   :  { %61 = dma.hbm_to_vmem [thread:$0]  %s4603_s6, 32, %s59_s13, [#allocation6]  }
  0x2c   :  { %s3693_s18 = smov [#allocation10]  }
  0x2d   :  { %s80_s19 = sshll.u32 %s3693_s18, 4  ;;  %s81_s19 = int_to_ptr.vmem [resolvable:$true] %s80_s19 }
  0x2e   :  { %s3647_s20 = scalar_lea.vmem %s81_s19, 32  ;;  %p3652_p7 = scmp.lt.s32.totalorder %s81_s19, %s81_s19 }
  0x2f   :  { %p3648_p6 = scmp.ne.s32.totalorder %s81_s19, %s3647_s20  ;;  %p3653_p8 = scmp.lt.s32.totalorder %s3647_s20, %s3647_s20 }
  0x31   :  { %p3654_p9 = por %p3653_p8, %p3652_p7 }
  0x33   :  { %p3655_p10 = pnand %p3654_p9, %p3648_p6 }
  0x35   :  { %3658 = shalt.err (!%p3655_p10)
}
  0x36   :  { %83 = dma.hbm_to_vmem [thread:$0]  %s4605_s8, 32, %s81_s19, [#allocation9]  }
  0x37   :  { %3679 = dma.done.wait [#allocation3], 8064  }
  0x38   :  { %3680 = vsyncadd [#allocation3], 4294959232 }
  0x39   :  { %3681 = dma.done.wait [#allocation6], 8096  }
  0x3a   :  { %3682 = vsyncadd [#allocation6], 4294959200 }
  0x3b   :  { %3683 = dma.done.wait [#allocation9], 11552  }
  0x3c   :  { %3684 = vsyncadd [#allocation9], 4294955744  ;;  %v3694_v0 = vmov 0   ;;  %vm143_vm0 = vcmask 1040384   ;;  %v2886_v1 = vld [vmem:[%s4598_s1 + $0x40] sm:$0x11] }
  0x3d   :  { %184 = vmatprep.mubr.bf16.mxu0 %v3694_v0  ;;  %352 = vmatprep.mubr.bf16.mxu1 %v3694_v0  ;;  %v145_v2 = vsel %vm143_vm0, 65535, %v3694_v0  ;;  %v2890_v3 = vcombine.high %v2886_v1, %v2886_v1  ;;  %v2889_v4 = vcombine.low %v2886_v1, %v2886_v1  ;;  %v2883_v5 = vld [vmem:[%s4598_s1 + $0x28] sm:$0x11]  ;;  %v3203_v8 = vld [vmem:[%s4598_s1 + $0x34] ss:$8 sps:$4 sm:$0xff]   ;;  %vm139_vm1 = vcmask 138240  }
  0x3e   :  { %v2895_v9 = vcombine.high %v2883_v5, %v2883_v5  ;;  %v114_v10 = vld [vmem:[%s4598_s1 + $0x10] sm:$0x11]  ;;  %v2879_v14 = vld [vmem:[%s4597_s0 + $0x8] sm:$0xff]  ;;  %v2894_v15 = vcombine.low %v2883_v5, %v2883_v5  ;;  %v3210_v22 = vld [vmem:[%s4598_s1 + $0x1c] ss:$8 sps:$4 sm:$0xff]   ;;  %vm693_vm2 = vcmask 1041408  }
  0x3f   :  { %v150_v6 = vand.u32 %v2890_v3, %v145_v2  ;;  %v147_v7 = vand.u32 %v2889_v4, %v145_v2  ;;  %v3205_v11 = vld [vmem:[%s4598_s1 + $0x30] ss:$8 sps:$4 sm:$0xff]   ;;  %v2901_v12 = vcombine.high %v114_v10, %v114_v10  ;;  %v2900_v13 = vcombine.low %v114_v10, %v114_v10  ;;  %v3213_v19 = vld [vmem:[%s4598_s1 + $0x4] ss:$8 sps:$4 sm:$0xff]   ;;  %v3215_v23 = vld [vmem:[%s4598_s1] ss:$8 sps:$4 sm:$0xff]  }
  0x40   :  { %v215_v16 = vand.u32 %v2895_v9, %v145_v2  ;;  %v3797_v20 = vpack.c.bf16 %v2879_v14, %v2879_v14  ;;  %v212_v21 = vand.u32 %v2894_v15, %v145_v2  ;;  %v104_v24 = vld [vmem:[%s4597_s0] sm:$0xff]  ;;  %v2880_v27 = vld [vmem:[%s4597_s0 + $0x10] sm:$0xff]  ;;  %v560_v53 = vld [vmem:[#allocation2 + $0x148] sm:$0x33]  ;;  %v4609_v55 = vmov 65535   ;;  %s3696_s25 = smov [#allocation11]  }
  0x41   :  { %164 = vmatprep.subr.bf16.mxu0 %v150_v6  ;;  %v318_v17 = vand.u32 %v2901_v12, %v145_v2  ;;  %v315_v18 = vand.u32 %v2900_v13, %v145_v2  ;;  %v3208_v25 = vld [vmem:[%s4598_s1 + $0x18] ss:$8 sps:$4 sm:$0xff]   ;;  %v105_v26 = vpack.c.bf16 %v104_v24, %v104_v24  ;;  %v3818_v28 = vld [vmem:[#allocation2 + $0x1c4] ss:$8 sps:$4 sm:$0xff]   ;;  %v3825_v30 = vld [vmem:[#allocation2 + $0x1b4] ss:$8 sps:$4 sm:$0xff]   ;;  %v111_v31 = vpack.c.bf16 %v2880_v27, %v2880_v27 }
  0x42   :  { %165 = vmatpush1.bf16.msra.mxu0 %v147_v7  ;;  %v3822_v29 = vld [vmem:[#allocation2 + $0x1c0] ss:$8 sps:$4 sm:$0xff]   ;;  %v3828_v32 = vld [vmem:[#allocation2 + $0x1b0] ss:$8 sps:$4 sm:$0xff]   ;;  %v3831_v33 = vld [vmem:[#allocation2 + $0x1a4] ss:$8 sps:$4 sm:$0xff]   ;;  %v2950_v54 = vcombine.high %v560_v53, %v560_v53  ;;  %v2949_v57 = vcombine.low %v560_v53, %v560_v53 }
  0x43   :  { %166 = vmatprep.subr.bf16.mxu0 %v3203_v8  ;;  %332 = vmatprep.subr.bf16.mxu1 %v318_v17  ;;  %v3837_v34 = vld [vmem:[#allocation2 + $0x1a0] ss:$8 sps:$4 sm:$0xff]   ;;  %v3844_v35 = vld [vmem:[#allocation2 + $0x11c] ss:$8 sps:$4 sm:$0xff]   ;;  %v3849_v37 = vld [vmem:[#allocation2 + $0x10c] ss:$8 sps:$4 sm:$0xff]  }
  0x44   :  { %333 = vmatpush1.bf16.msra.mxu1 %v315_v18  ;;  %v3847_v36 = vld [vmem:[#allocation2 + $0x118] ss:$8 sps:$4 sm:$0xff]   ;;  %v3852_v38 = vld [vmem:[#allocation2 + $0x108] ss:$8 sps:$4 sm:$0xff]   ;;  %v3856_v39 = vld [vmem:[#allocation2 + $0xfc] ss:$8 sps:$4 sm:$0xff]  }
  0x45   :  { %334 = vmatprep.subr.bf16.mxu1 %v3213_v19  ;;  %v3860_v40 = vld [vmem:[#allocation2 + $0xf8] ss:$8 sps:$4 sm:$0xff]   ;;  %v3862_v41 = vld [vmem:[#allocation2 + $0xec] ss:$8 sps:$4 sm:$0xff]   ;;  %v3866_v42 = vld [vmem:[#allocation2 + $0xe8] ss:$8 sps:$4 sm:$0xff]  }
  0x46   :  { %167 = vmatpush1.bf16.msra.mxu0 %v3205_v11  ;;  %v3868_v43 = vld [vmem:[#allocation2 + $0xdc] ss:$8 sps:$4 sm:$0xff]   ;;  %v3872_v44 = vld [vmem:[#allocation2 + $0xd8] ss:$8 sps:$4 sm:$0xff]   ;;  %v3874_v45 = vld [vmem:[#allocation2 + $0xcc] ss:$8 sps:$4 sm:$0xff]  }
  0x47   :  { %229 = vmatprep.subr.bf16.mxu0 %v215_v16  ;;  %v3878_v46 = vld [vmem:[#allocation2 + $0xc8] ss:$8 sps:$4 sm:$0xff]   ;;  %v3880_v47 = vld [vmem:[#allocation2 + $0xbc] ss:$8 sps:$4 sm:$0xff]   ;;  %v3884_v48 = vld [vmem:[#allocation2 + $0xb8] ss:$8 sps:$4 sm:$0xff]  }
  0x48   :  { %335 = vmatpush1.bf16.msra.mxu1 %v3215_v23  ;;  %v3889_v49 = vld [vmem:[#allocation2 + $0x194] ss:$8 sps:$4 sm:$0xff]   ;;  %v3893_v51 = vld [vmem:[#allocation2 + $0x190] ss:$8 sps:$4 sm:$0xff]   ;;  %v694_v56 = vsel %vm143_vm0, 4294967295, %v4609_v55  ;;  %vm689_vm3 = vcmask 285696  }
  0x49   :  { %2891 = vmatmul.mubr.msk.bf16.vlgmr.msra.gmra.mxu0 %vm139_vm1, %v3797_v20  ;;  %419 = vmatprep.subr.bf16.mxu1 %v215_v16  ;;  %v3891_v50 = vld [vmem:[#allocation2 + $0xac] ss:$8 sps:$4 sm:$0xff]   ;;  %v3895_v52 = vld [vmem:[#allocation2 + $0xa8] ss:$8 sps:$4 sm:$0xff]   ;;  %v3905_v59 = vsel %vm693_vm2, %v694_v56, 0  ;;  %vm1419_vm4 = vcmask 277504  }
  0x4a   :  { %230 = vmatpush1.bf16.msra.mxu0 %v212_v21  ;;  %249 = vmatprep.mubr.bf16.mxu0 %v3694_v0  ;;  %v3903_v58 = vld [vmem:[#allocation2 + $0x184] ss:$8 sps:$4 sm:$0xff]   ;;  %v3907_v60 = vld [vmem:[#allocation2 + $0x180] ss:$8 sps:$4 sm:$0xff]   ;;  %v3910_v61 = vand.u32 %v2950_v54, %v3905_v59  ;;  %v3913_v62 = vand.u32 %v2949_v57, %v3905_v59  ;;  %v3919_v63 = vld [vmem:[#allocation2 + $0x174] ss:$8 sps:$4 sm:$0xff]  }
  0x4b   :  { %231 = vmatprep.subr.bf16.mxu0 %v3210_v22  ;;  %2902 = vmatmul.mubr.msk.bf16.vlgmr.msra.gmra.mxu1 %vm139_vm1, %v105_v26  ;;  %v3923_v1 = vld [vmem:[#allocation2 + $0x170] ss:$8 sps:$4 sm:$0xff]   ;;  %v3931_v3 = vld [vmem:[#allocation2 + $0x164] ss:$8 sps:$4 sm:$0xff]   ;;  %v3935_v5 = vld [vmem:[#allocation2 + $0x160] ss:$8 sps:$4 sm:$0xff]  }
  0x4c   :  { %420 = vmatpush1.bf16.msra.mxu1 %v212_v21  ;;  %439 = vmatprep.mubr.bf16.mxu1 %v3694_v0  ;;  %v3925_v2 = vld [vmem:[#allocation2 + $0x138] ss:$8 sps:$4 sm:$0xff]   ;;  %v3933_v4 = vld [vmem:[#allocation2 + $0x12c] ss:$8 sps:$4 sm:$0xff]   ;;  %vm2188_vm5 = vcmask 1044480   ;;  %vm2189_vm6 = vcmask 1045504  }
  0x4d   :  { %421 = vmatprep.subr.bf16.mxu1 %v3210_v22  ;;  %v3947_v9 = vld [vmem:[#allocation2 + $0x150] ss:$8 sps:$4 sm:$0xff]   ;;  %v3960_v15 = vld [vmem:[#allocation2 + $0x1e4] ss:$8 sps:$4 sm:$0xff]   ;;  %vm2184_vm7 = vcmask 875520   ;;  %s2868_s26 = sshll.u32 %s3696_s25, 4  ;;  %s2869_s26 = int_to_ptr.vmem [resolvable:$true] %s2868_s26 }
  0x4e   :  { %232 = vmatpush1.bf16.msra.mxu0 %v3208_v25  ;;  %v582_v10 = vld [vmem:[#allocation2 + $0x1f0] sm:$0x33]  ;;  %4646 = vst [vmem:[#allocation17_spill] sm:$0xff] %v3960_v15  ;;  %s3659_s27 = scalar_lea.vmem %s2869_s26, 128  ;;  %p3664_p12 = scmp.lt.s32.totalorder %s2869_s26, %s2869_s26 }
  0x4f   :  { %270 = vmatprep.subr.bf16.mxu0 %v215_v16  ;;  %v2926_v12 = vcombine.low %v582_v10, %v582_v10  ;;  %v3962_v16 = vld [vmem:[#allocation2 + $0x1e0] ss:$8 sps:$4 sm:$0xff]   ;;  %p3660_p11 = scmp.ne.s32.totalorder %s2869_s26, %s3659_s27  ;;  %p3665_p13 = scmp.lt.s32.totalorder %s3659_s27, %s3659_s27 }
  0x50   :  { %422 = vmatpush1.bf16.msra.mxu1 %v3208_v25  ;;  %4647 = vst [vmem:[#allocation18_spill] sm:$0xff] %v3962_v16 }
  0x51   :  { %2896 = vmatmul.mubr.msk.bf16.vlgmr.msra.gmra.mxu0 %vm139_vm1, %v105_v26  ;;  %702 = vmatprep.subr.bf16.mxu1 %v3818_v28  ;;  %v3956_v14 = vand.u32 %v2926_v12, %v3905_v59  ;;  %p3666_p0 = por %p3665_p13, %p3664_p12 }
  0x52   :  { %271 = vmatpush1.bf16.msra.mxu0 %v212_v21  ;;  %290 = vmatprep.mubr.bf16.mxu0 %v3694_v0 }
  0x53   :  { %272 = vmatprep.subr.bf16.mxu0 %v3210_v22  ;;  %2904 = vmatmul.mubr.msk.bf16.vlgmr.msra.gmra.mxu1 %vm139_vm1, %v111_v31  ;;  %p3667_p1 = pnand %p3666_p0, %p3660_p11 }
  0x54   :  { %703 = vmatpush1.bf16.msra.mxu1 %v3822_v29 }
  0x55   :  { %704 = vmatprep.subr.bf16.mxu1 %v3825_v30 }
  0x56   :  { %273 = vmatpush1.bf16.msra.mxu0 %v3208_v25  ;;  %v123_v25 = vld [vmem:[%s4599_s2] sm:$0x3] }
  0x57   :  { %376 = vmatprep.subr.bf16.mxu0 %v150_v6  ;;  %v3937_v6 = vld [vmem:[#allocation2 + $0x128] ss:$8 sps:$4 sm:$0xff]  }
  0x58   :  { %705 = vmatpush1.bf16.msra.mxu1 %v3828_v32 }
  0x59   :  { %2897 = vmatmul.mubr.msk.bf16.vlgmr.msra.gmra.mxu0 %vm139_vm1, %v3797_v20  ;;  %706 = vmatprep.subr.bf16.mxu1 %v3831_v33 }
  0x5a   :  { %377 = vmatpush1.bf16.msra.mxu0 %v147_v7  ;;  %396 = vmatprep.mubr.bf16.mxu0 %v3694_v0  ;;  %v3943_v7 = vld [vmem:[#allocation2 + $0x154] ss:$8 sps:$4 sm:$0xff]  }
  0x5b   :  { %378 = vmatprep.subr.bf16.mxu0 %v3203_v8  ;;  %v3945_v8 = vld [vmem:[#allocation2 + $0x74] ss:$8 sps:$4 sm:$0xff]  }
  0x5c   :  { %707 = vmatpush1.bf16.msra.mxu1 %v3837_v34  ;;  %4645 = vst [vmem:[#allocation16_spill] sm:$0xff] %v3945_v8 }
  0x5d   :  { %708 = vmatprep.subr.bf16.mxu1 %v3889_v49 }
  0x5e   :  { %379 = vmatpush1.bf16.msra.mxu0 %v3205_v11  ;;  %v2927_v11 = vcombine.high %v582_v10, %v582_v10 }
  0x5f   :  { %460 = vmatprep.subr.bf16.mxu0 %v318_v17  ;;  %v3966_v17 = vld [vmem:[#allocation2 + $0x1d4] ss:$8 sps:$4 sm:$0xff]  }
  0x60   :  { %709 = vmatpush1.bf16.msra.mxu1 %v3893_v51  ;;  %v3953_v13 = vand.u32 %v2927_v11, %v3905_v59  ;;  %4648 = vst [vmem:[#allocation19_spill] sm:$0xff] %v3966_v17 }
  0x61   :  { %2903 = vmatmul.mubr.msk.bf16.vlgmr.msra.gmra.mxu0 %vm139_vm1, %v111_v31  ;;  %710 = vmatprep.subr.bf16.mxu1 %v3903_v58 }
  0x62   :  { %461 = vmatpush1.bf16.msra.mxu0 %v315_v18  ;;  %480 = vmatprep.mubr.bf16.mxu0 %v3694_v0  ;;  %v3921_v0 = vld [vmem:[#allocation2 + $0x13c] ss:$8 sps:$4 sm:$0xff]   ;;  %v3968_v18 = vld [vmem:[#allocation2 + $0x1d0] ss:$8 sps:$4 sm:$0xff]  }
  0x63   :  { %462 = vmatprep.subr.bf16.mxu0 %v3213_v19  ;;  %4649 = vst [vmem:[#allocation20_spill] sm:$0xff] %v3968_v18  ;;  %v490_v19 = vlaneseq }
  0x64   :  { %711 = vmatpush1.bf16.msra.mxu1 %v3907_v60 }
  0x65   :  { %712 = vmatprep.subr.bf16.mxu1 %v3919_v63 }
  0x66   :  { %463 = vmatpush1.bf16.msra.mxu0 %v3215_v23 }
  0x67   :  { %857 = vmatprep.subr.bf16.mxu0 %v3844_v35 }
  0x68   :  { %713 = vmatpush1.bf16.msra.mxu1 %v3923_v1 }
  0x69   :  { %2905 = vmatmul.mubr.msk.bf16.vlgmr.msra.gmra.mxu0 %vm139_vm1, %v3797_v20  ;;  %714 = vmatprep.subr.bf16.mxu1 %v3931_v3  ;;  %v491_v20 = vshrl.u32 %v490_v19, 7 }
  0x6a   :  { %858 = vmatpush1.bf16.msra.mxu0 %v3847_v36 }
  0x6b   :  { %859 = vmatprep.subr.bf16.mxu0 %v3849_v37  ;;  %v3973_v23 = vsub.s32 0, %v491_v20  ;;  %v3978_v26 = vsub.s32 1, %v491_v20 }
  0x6c   :  { %715 = vmatpush1.bf16.msra.mxu1 %v3935_v5 }
  0x6d   :  { %716 = vmatprep.subr.bf16.mxu1 %v3943_v7  ;;  %4650 = vst [vmem:[#allocation21_spill] sm:$0xff] %v3973_v23  ;;  %4651 = vst [vmem:[#allocation22_spill] sm:$0xff] %v3978_v26  ;;  %v3981_v53 = vrot.slane %v123_v25, %v3973_v23  ;;  %v3984_v10 = vrot.slane %v123_v25, %v3978_v26  ;;  %v3990_v25 = vld [vmem:[#allocation2 + $0x70] ss:$8 sps:$4 sm:$0xff]  }
  0x6e   :  { %860 = vmatpush1.bf16.msra.mxu0 %v3852_v38 }
  0x6f   :  { %861 = vmatprep.subr.bf16.mxu0 %v3856_v39 }
  0x70   :  { %717 = vmatpush1.bf16.msra.mxu1 %v3947_v9 }
  0x71   :  { %728 = vmatprep.subr.bf16.mxu1 %v3953_v13 }
  0x72   :  { %862 = vmatpush1.bf16.msra.mxu0 %v3860_v40 }
  0x73   :  { %863 = vmatprep.subr.bf16.mxu0 %v3862_v41 }
  0x74   :  { %729 = vmatpush2.bf16.msra.mxu1 %v3956_v14 }
  0x75   :  { %730 = vmatprep.subr.bf16.mxu1 %v3960_v15 }
  0x76   :  { %864 = vmatpush1.bf16.msra.mxu0 %v3866_v42 }
  0x77   :  { %865 = vmatprep.subr.bf16.mxu0 %v3868_v43 }
  0x78   :  { %731 = vmatpush2.bf16.msra.mxu1 %v3962_v16 }
  0x79   :  { %732 = vmatprep.subr.bf16.mxu1 %v3966_v17 }
  0x7a   :  { %866 = vmatpush1.bf16.msra.mxu0 %v3872_v44 }
  0x7b   :  { %867 = vmatprep.subr.bf16.mxu0 %v3874_v45 }
  0x7c   :  { %733 = vmatpush2.bf16.msra.mxu1 %v3968_v18 }
  0x7d   :  { %898 = vmatprep.subr.bf16.mxu1 %v3844_v35 }
  0x7e   :  { %868 = vmatpush1.bf16.msra.mxu0 %v3878_v46 }
  0x7f   :  { %869 = vmatprep.subr.bf16.mxu0 %v3880_v47 }
  0x82   :  { %870 = vmatpush1.bf16.msra.mxu0 %v3884_v48 }
  0x83   :  { %871 = vmatprep.subr.bf16.mxu0 %v3891_v50 }
  0x86   :  { %872 = vmatpush1.bf16.msra.mxu0 %v3895_v52 }
  0x87   :  { %883 = vmatprep.subr.bf16.mxu0 %v3910_v61 }
  0x8a   :  { %884 = vmatpush2.bf16.msra.mxu0 %v3913_v62 }
  0x8b   :  { %885 = vmatprep.subr.bf16.mxu0 %v3921_v0 }
  0x8e   :  { %886 = vmatpush2.bf16.msra.mxu0 %v3925_v2 }
  0x8f   :  { %887 = vmatprep.subr.bf16.mxu0 %v3933_v4 }
  0x92   :  { %888 = vmatpush2.bf16.msra.mxu0 %v3937_v6 }
  0x93   :  { %1050 = vmatprep.subr.bf16.mxu0 %v3945_v8 }
 0x109   :  { %v186_v21 = vpop.f32.mrf.mxu0 }
 0x10b   :  { %v188_v22 = vpop.f32.mrf.mxu0  ;;  %v354_v27 = vpop.f32.mrf.mxu1 }
 0x10d   :  { %v190_v24 = vpop.f32.mrf.mxu0  ;;  %v356_v54 = vpop.f32.mrf.mxu1 }
 0x10f   :  { %v191_v31 = vpop.f32.mrf.mxu0  ;;  %v358_v11 = vpop.f32.mrf.mxu1 }
 0x111   :  { %v251_v56 = vpop.f32.mrf.mxu0  ;;  %v359_v55 = vpop.f32.mrf.mxu1 }
 0x112   :  { %v252_v57 = vadd.f32 %v251_v56, %v186_v21 }
 0x113   :  { %v253_v12 = vpop.f32.mrf.mxu0  ;;  %v441_v18 = vpop.f32.mrf.mxu1 }
 0x114   :  { %v500_v19 = vadd.f32 %v3981_v53, %v252_v57  ;;  %v254_v24 = vadd.f32 %v253_v12, %v188_v22  ;;  %v3994_v22 = vld [vmem:[#allocation2 + $0x64] ss:$8 sps:$4 sm:$0xff]   ;;  %v4003_v12 = vld [vmem:[#allocation2 + $0x54] ss:$8 sps:$4 sm:$0xff]  }
 0x115   :  { %v255_v8 = vpop.f32.mrf.mxu0  ;;  %v3988_v16 = vpop.f32.mrf.mxu1  ;;  %4652 = vst [vmem:[#allocation23_spill] sm:$0xff] %v3994_v22  ;;  %4653 = vst [vmem:[#allocation24_spill] sm:$0xff] %v4003_v12 }
 0x116   :  { %v501_v20 = vadd.f32 %v3984_v10, %v254_v24  ;;  %v502_v31 = vmax.f32 %v500_v19, 0.0 }
 0x117   :  { %v256_v17 = vpop.f32.mrf.mxu0  ;;  %v445_v56 = vpop.f32.mrf.mxu1 }
 0x118   :  { %v503_v23 = vmax.f32 %v501_v20, 0.0  ;;  %v3992_v11 = vpack.c.bf16 %v502_v31, %v502_v31  ;;  %v4000_v17 = vld [vmem:[#allocation2 + $0x60] ss:$8 sps:$4 sm:$0xff]   ;;  %v4006_v56 = vld [vmem:[#allocation2 + $0x50] ss:$8 sps:$4 sm:$0xff]  }
 0x119   :  { %v292_v15 = vpop.f32.mrf.mxu0  ;;  %v446_v55 = vpop.f32.mrf.mxu1 }
 0x11a   :  { %v505_v21 = vpack.c.bf16 %v503_v23, %v503_v23  ;;  %v355_v19 = vadd.f32 %v354_v27, %v292_v15  ;;  %v4014_v15 = vld [vmem:[#allocation2 + $0x40] ss:$8 sps:$4 sm:$0xff]  }
 0x11b   :  { %v294_v57 = vpop.f32.mrf.mxu0 }
 0x11c   :  { %2951 = vmatprep.mubr.msk.bf16.mxu0 %vm689_vm3, %v505_v21  ;;  %v357_v20 = vadd.f32 %v356_v54, %v294_v57  ;;  %v4017_v57 = vld [vmem:[#allocation2 + $0x34] ss:$8 sps:$4 sm:$0xff]  }
 0x11d   :  { %v296_v8 = vpop.f32.mrf.mxu0  ;;  %890 = vmatmul.mubr.bf16.vlgmr.msra.gmra.mxu0 %v3992_v11 }
 0x11e   :  { %1051 = vmatpush1.bf16.msra.mxu0 %v3990_v25  ;;  %2975 = vmatprep.mubr.msk.bf16.mxu0 %vm689_vm3, %v505_v21  ;;  %v4009_v8 = vld [vmem:[#allocation2 + $0x44] ss:$8 sps:$4 sm:$0xff]  }
 0x11f   :  { %v297_v23 = vpop.f32.mrf.mxu0  ;;  %1052 = vmatprep.subr.bf16.mxu0 %v3994_v22 }
 0x121   :  { %v398_v24 = vpop.f32.mrf.mxu0 }
 0x122   :  { %v405_v31 = vadd.f32 %v398_v24, %v355_v19  ;;  %1053 = vmatpush1.bf16.msra.mxu0 %v4000_v17 }
 0x123   :  { %v400_v55 = vpop.f32.mrf.mxu0  ;;  %1054 = vmatprep.subr.bf16.mxu0 %v4003_v12 }
 0x124   :  { %v506_v21 = vadd.f32 %v3981_v53, %v405_v31  ;;  %v406_v23 = vadd.f32 %v400_v55, %v357_v20  ;;  %v4022_v20 = vld [vmem:[#allocation2 + $0x30] ss:$8 sps:$4 sm:$0xff]  }
 0x125   :  { %v402_v26 = vpop.f32.mrf.mxu0 }
 0x126   :  { %v507_v22 = vadd.f32 %v3984_v10, %v406_v23  ;;  %1055 = vmatpush1.bf16.msra.mxu0 %v4006_v56  ;;  %v508_v27 = vmax.f32 %v506_v21, 0.0  ;;  %v4029_v21 = vld [vmem:[#allocation2 + $0x24] ss:$8 sps:$4 sm:$0xff]  }
 0x127   :  { %v403_v54 = vpop.f32.mrf.mxu0  ;;  %1056 = vmatprep.subr.bf16.mxu0 %v4009_v8 }
 0x128   :  { %v509_v19 = vmax.f32 %v507_v22, 0.0  ;;  %v4024_v31 = vpack.c.bf16 %v508_v27, %v508_v27  ;;  %v4042_v27 = vld [vmem:[#allocation2 + $0x14] ss:$8 sps:$4 sm:$0xff]  }
 0x129   :  { %v482_v24 = vpop.f32.mrf.mxu0  ;;  %4655 = vst [vmem:[#allocation26_spill] sm:$0xff] %v4042_v27 }
 0x12a   :  { %v4019_v12 = vpack.c.bf16 %v509_v19, %v509_v19  ;;  %1057 = vmatpush1.bf16.msra.mxu0 %v4014_v15  ;;  %v483_v26 = vadd.f32 %v482_v24, %v441_v18  ;;  %v4037_v18 = vld [vmem:[#allocation2 + $0x20] ss:$8 sps:$4 sm:$0xff]   ;;  %v4047_v19 = vld [vmem:[#allocation2 + $0x10] ss:$8 sps:$4 sm:$0xff]   ;;  %v4051_v24 = vld [vmem:[#allocation2 + $0x4] ss:$8 sps:$4 sm:$0xff]  }
 0x12b   :  { %1058 = vmatprep.subr.bf16.mxu0 %v4017_v57  ;;  %v484_v55 = vpop.f32.mrf.mxu0  ;;  %4654 = vst [vmem:[#allocation25_spill] sm:$0xff] %v4037_v18  ;;  %4656 = vst [vmem:[#allocation27_spill] sm:$0xff] %v4047_v19 }
 0x12c   :  { %2928 = vmatprep.mubr.msk.bf16.mxu1 %vm689_vm3, %v4019_v12  ;;  %v4032_v22 = vadd.f32 %v3981_v53, %v483_v26  ;;  %v538_v53 = vld [vmem:[#allocation2 + $0xa0] sm:$0x33] }
 0x12d   :  { %735 = vmatmul.mubr.bf16.vlgmr.msra.gmra.mxu1 %v4024_v31  ;;  %v486_v23 = vpop.f32.mrf.mxu0  ;;  %v2974_v26 = vcombine.high %v538_v53, %v538_v53 }
 0x12e   :  { %899 = vmatpush1.bf16.msra.mxu1 %v3847_v36  ;;  %1059 = vmatpush1.bf16.msra.mxu0 %v4022_v20  ;;  %v4055_v23 = vld [vmem:[#allocation2] ss:$8 sps:$4 sm:$0xff]  }
 0x12f   :  { %2952 = vmatprep.mubr.msk.bf16.mxu1 %vm689_vm3, %v4019_v12  ;;  %900 = vmatprep.subr.bf16.mxu1 %v3849_v37  ;;  %v487_v54 = vpop.f32.mrf.mxu0 }
 0x130   :  { %1060 = vmatprep.subr.bf16.mxu0 %v4029_v21  ;;  %v2973_v54 = vcombine.low %v538_v53, %v538_v53  ;;  %v485_v53 = vadd.f32 %v484_v55, %v3988_v16  ;;  %v1290_v55 = vld [vmem:[#allocation5 + $0x148] sm:$0x11] }
 0x132   :  { %901 = vmatpush1.bf16.msra.mxu1 %v3852_v38  ;;  %1061 = vmatpush1.bf16.msra.mxu0 %v4037_v18  ;;  %v4060_v18 = vand.u32 %v2974_v26, %v3905_v59  ;;  %v4074_v26 = vld [vmem:[#allocation2 + $0x90] ss:$8 sps:$4 sm:$0xff]  }
 0x133   :  { %902 = vmatprep.subr.bf16.mxu1 %v3856_v39  ;;  %1062 = vmatprep.subr.bf16.mxu0 %v4042_v27  ;;  %v4065_v27 = vand.u32 %v2973_v54, %v3905_v59  ;;  %v4078_v59 = vld [vmem:[#allocation2 + $0x84] ss:$8 sps:$4 sm:$0xff]   ;;  %v513_v54 = vadd.f32 %v3984_v10, %v485_v53  ;;  %v4298_v53 = vld [vmem:[#allocation5 + $0x138] ss:$8 sps:$4 sm:$0xff]  }
 0x134   :  { %4657 = vst [vmem:[#allocation28_spill] sm:$0xff] %v4060_v18 }
 0x135   :  { %v515_v16 = vmax.f32 %v513_v54, 0.0  ;;  %v4307_v54 = vld [vmem:[#allocation5 + $0x74] ss:$8 sps:$4 sm:$0xff]  }
 0x136   :  { %903 = vmatpush1.bf16.msra.mxu1 %v3860_v40  ;;  %1063 = vmatpush1.bf16.msra.mxu0 %v4047_v19  ;;  %v4069_v19 = vld [vmem:[#allocation2 + $0x94] ss:$8 sps:$4 sm:$0xff]  }
 0x137   :  { %904 = vmatprep.subr.bf16.mxu1 %v3862_v41  ;;  %1064 = vmatprep.subr.bf16.mxu0 %v4051_v24  ;;  %v517_v10 = vpack.c.bf16 %v515_v16, %v515_v16 }
 0x13a   :  { %905 = vmatpush1.bf16.msra.mxu1 %v3866_v42  ;;  %1065 = vmatpush1.bf16.msra.mxu0 %v4055_v23 }
 0x13b   :  { %906 = vmatprep.subr.bf16.mxu1 %v3868_v43  ;;  %1076 = vmatprep.subr.bf16.mxu0 %v4060_v18  ;;  %v4083_v18 = vld [vmem:[#allocation2 + $0x80] ss:$8 sps:$4 sm:$0xff]  }
 0x13e   :  { %907 = vmatpush1.bf16.msra.mxu1 %v3872_v44  ;;  %1077 = vmatpush2.bf16.msra.mxu0 %v4065_v27 }
 0x13f   :  { %908 = vmatprep.subr.bf16.mxu1 %v3874_v45  ;;  %1078 = vmatprep.subr.bf16.mxu0 %v4069_v19 }
 0x142   :  { %909 = vmatpush1.bf16.msra.mxu1 %v3878_v46  ;;  %1079 = vmatpush2.bf16.msra.mxu0 %v4074_v26 }
 0x143   :  { %910 = vmatprep.subr.bf16.mxu1 %v3880_v47  ;;  %1080 = vmatprep.subr.bf16.mxu0 %v4078_v59 }
 0x146   :  { %911 = vmatpush1.bf16.msra.mxu1 %v3884_v48  ;;  %1081 = vmatpush2.bf16.msra.mxu0 %v4083_v18 }
 0x147   :  { %912 = vmatprep.subr.bf16.mxu1 %v3891_v50  ;;  %1137 = vmatprep.subr.bf16.mxu0 %v3844_v35  ;;  %v4662_v35 = vld [vmem:[#allocation16_spill] sm:$0xff] }
 0x149   :  { %1083 = vmatmul.mubr.bf16.vlgmr.msra.gmra.mxu0 %v3992_v11  ;;  %v4249_v11 = vld [vmem:[#allocation5 + $0xcc] ss:$8 sps:$4 sm:$0xff]  }
 0x14a   :  { %913 = vmatpush1.bf16.msra.mxu1 %v3895_v52  ;;  %1138 = vmatpush1.bf16.msra.mxu0 %v3847_v36  ;;  %v4663_v36 = vld [vmem:[#allocation23_spill] sm:$0xff] }
 0x14b   :  { %924 = vmatprep.subr.bf16.mxu1 %v3910_v61  ;;  %1139 = vmatprep.subr.bf16.mxu0 %v3849_v37  ;;  %v4664_v37 = vld [vmem:[#allocation24_spill] sm:$0xff] }
 0x14c   :  { %2977 = vmatprep.mubr.msk.bf16.mxu0 %vm689_vm3, %v517_v10 }
 0x14e   :  { %925 = vmatpush2.bf16.msra.mxu1 %v3913_v62  ;;  %1140 = vmatpush1.bf16.msra.mxu0 %v3852_v38  ;;  %v4665_v38 = vld [vmem:[#allocation25_spill] sm:$0xff] }
 0x14f   :  { %926 = vmatprep.subr.bf16.mxu1 %v3921_v0  ;;  %1141 = vmatprep.subr.bf16.mxu0 %v3856_v39  ;;  %v4666_v39 = vld [vmem:[#allocation26_spill] sm:$0xff] }
 0x152   :  { %927 = vmatpush2.bf16.msra.mxu1 %v3925_v2  ;;  %1142 = vmatpush1.bf16.msra.mxu0 %v3860_v40  ;;  %v4667_v40 = vld [vmem:[#allocation27_spill] sm:$0xff] }
 0x153   :  { %928 = vmatprep.subr.bf16.mxu1 %v3933_v4  ;;  %1143 = vmatprep.subr.bf16.mxu0 %v3862_v41  ;;  %v4164_v41 = vld [vmem:[#allocation5 + $0x1c0] ss:$8 sps:$4 sm:$0xff]  }
 0x156   :  { %929 = vmatpush2.bf16.msra.mxu1 %v3937_v6  ;;  %1144 = vmatpush1.bf16.msra.mxu0 %v3866_v42  ;;  %v4166_v42 = vld [vmem:[#allocation5 + $0x1c4] ss:$8 sps:$4 sm:$0xff]  }
 0x157   :  { %1094 = vmatprep.subr.bf16.mxu1 %v3818_v28  ;;  %1145 = vmatprep.subr.bf16.mxu0 %v3868_v43  ;;  %v514_v28 = vmax.f32 %v4032_v22, 0.0  ;;  %v4668_v43 = vld [vmem:[#allocation28_spill] sm:$0xff] }
 0x158   :  { %v4279_v22 = vld [vmem:[#allocation5 + $0x1d4] ss:$8 sps:$4 sm:$0xff]  }
 0x159   :  { %931 = vmatmul.mubr.bf16.vlgmr.msra.gmra.mxu1 %v4024_v31 }
 0x15a   :  { %1095 = vmatpush1.bf16.msra.mxu1 %v3822_v29  ;;  %1146 = vmatpush1.bf16.msra.mxu0 %v3872_v44  ;;  %v516_v29 = vpack.c.bf16 %v514_v28, %v514_v28  ;;  %v4171_v44 = vld [vmem:[#allocation5 + $0x1b0] ss:$8 sps:$4 sm:$0xff]  }
 0x15b   :  { %1096 = vmatprep.subr.bf16.mxu1 %v3825_v30  ;;  %1147 = vmatprep.subr.bf16.mxu0 %v3874_v45  ;;  %v4658_v30 = vld [vmem:[#allocation17_spill] sm:$0xff] }
 0x15c   :  { %2976 = vmatprep.mubr.msk.bf16.mxu1 %vm689_vm3, %v517_v10  ;;  %v4173_v45 = vld [vmem:[#allocation5 + $0x1b4] ss:$8 sps:$4 sm:$0xff]   ;;  %4669 = vst [vmem:[#allocation17_spill] sm:$0xff] %v4307_v54 }
 0x15e   :  { %1097 = vmatpush1.bf16.msra.mxu1 %v3828_v32  ;;  %1148 = vmatpush1.bf16.msra.mxu0 %v3878_v46  ;;  %v4659_v32 = vld [vmem:[#allocation18_spill] sm:$0xff] }
 0x15f   :  { %1098 = vmatprep.subr.bf16.mxu1 %v3831_v33  ;;  %1149 = vmatprep.subr.bf16.mxu0 %v3880_v47  ;;  %v4660_v33 = vld [vmem:[#allocation19_spill] sm:$0xff]  ;;  %v4181_v47 = vld [vmem:[#allocation5 + $0x1a0] ss:$8 sps:$4 sm:$0xff]  }
 0x160   :  { %v4176_v46 = vld [vmem:[#allocation5 + $0x1a4] ss:$8 sps:$4 sm:$0xff]  }
 0x162   :  { %1099 = vmatpush1.bf16.msra.mxu1 %v3837_v34  ;;  %1150 = vmatpush1.bf16.msra.mxu0 %v3884_v48  ;;  %v4661_v34 = vld [vmem:[#allocation20_spill] sm:$0xff] }
 0x163   :  { %1100 = vmatprep.subr.bf16.mxu1 %v3889_v49  ;;  %1151 = vmatprep.subr.bf16.mxu0 %v3891_v50  ;;  %v4185_v48 = vld [vmem:[#allocation5 + $0x194] ss:$8 sps:$4 sm:$0xff]   ;;  %v4191_v50 = vld [vmem:[#allocation5 + $0x190] ss:$8 sps:$4 sm:$0xff]  }
 0x164   :  { %v4188_v49 = vld [vmem:[#allocation5 + $0x11c] ss:$8 sps:$4 sm:$0xff]  }
 0x166   :  { %1101 = vmatpush1.bf16.msra.mxu1 %v3893_v51  ;;  %1152 = vmatpush1.bf16.msra.mxu0 %v3895_v52  ;;  %v4194_v51 = vld [vmem:[#allocation5 + $0x118] ss:$8 sps:$4 sm:$0xff]   ;;  %v4197_v52 = vld [vmem:[#allocation5 + $0x184] ss:$8 sps:$4 sm:$0xff]  }
 0x167   :  { %1102 = vmatprep.subr.bf16.mxu1 %v3903_v58  ;;  %1163 = vmatprep.subr.bf16.mxu0 %v3910_v61  ;;  %v4200_v58 = vld [vmem:[#allocation5 + $0x10c] ss:$8 sps:$4 sm:$0xff]   ;;  %v4207_v61 = vld [vmem:[#allocation5 + $0x108] ss:$8 sps:$4 sm:$0xff]  }
 0x16a   :  { %1103 = vmatpush1.bf16.msra.mxu1 %v3907_v60  ;;  %1164 = vmatpush2.bf16.msra.mxu0 %v3913_v62  ;;  %v4204_v60 = vld [vmem:[#allocation5 + $0x180] ss:$8 sps:$4 sm:$0xff]   ;;  %v4210_v62 = vld [vmem:[#allocation5 + $0x174] ss:$8 sps:$4 sm:$0xff]  }
 0x16b   :  { %1104 = vmatprep.subr.bf16.mxu1 %v3919_v63  ;;  %1165 = vmatprep.subr.bf16.mxu0 %v3921_v0  ;;  %v4213_v63 = vld [vmem:[#allocation5 + $0xfc] ss:$8 sps:$4 sm:$0xff]   ;;  %v4216_v0 = vld [vmem:[#allocation5 + $0x170] ss:$8 sps:$4 sm:$0xff]  }
 0x16e   :  { %1105 = vmatpush1.bf16.msra.mxu1 %v3923_v1  ;;  %1166 = vmatpush2.bf16.msra.mxu0 %v3925_v2  ;;  %v4219_v1 = vld [vmem:[#allocation5 + $0xf8] ss:$8 sps:$4 sm:$0xff]   ;;  %v4222_v2 = vld [vmem:[#allocation5 + $0x164] ss:$8 sps:$4 sm:$0xff]  }
 0x16f   :  { %1106 = vmatprep.subr.bf16.mxu1 %v3931_v3  ;;  %1167 = vmatprep.subr.bf16.mxu0 %v3933_v4  ;;  %v4225_v3 = vld [vmem:[#allocation5 + $0xec] ss:$8 sps:$4 sm:$0xff]   ;;  %v4228_v4 = vld [vmem:[#allocation5 + $0x160] ss:$8 sps:$4 sm:$0xff]  }
 0x172   :  { %1107 = vmatpush1.bf16.msra.mxu1 %v3935_v5  ;;  %1168 = vmatpush2.bf16.msra.mxu0 %v3937_v6  ;;  %v4231_v5 = vld [vmem:[#allocation5 + $0xe8] ss:$8 sps:$4 sm:$0xff]   ;;  %v4234_v6 = vld [vmem:[#allocation5 + $0x154] ss:$8 sps:$4 sm:$0xff]  }
 0x173   :  { %1108 = vmatprep.subr.bf16.mxu1 %v3943_v7  ;;  %1429 = vmatprep.subr.bf16.mxu0 %v4166_v42  ;;  %v4237_v7 = vld [vmem:[#allocation5 + $0xdc] ss:$8 sps:$4 sm:$0xff]  }
 0x175   :  { %1170 = vmatmul.mubr.bf16.vlgmr.msra.gmra.mxu0 %v516_v29 }
 0x176   :  { %1109 = vmatpush1.bf16.msra.mxu1 %v3947_v9  ;;  %1430 = vmatpush1.bf16.msra.mxu0 %v4164_v41  ;;  %v1312_v9 = vld [vmem:[#allocation5 + $0x1f0] sm:$0x11] }
 0x177   :  { %1120 = vmatprep.subr.bf16.mxu1 %v3953_v13  ;;  %1431 = vmatprep.subr.bf16.mxu0 %v4173_v45  ;;  %v4240_v13 = vld [vmem:[#allocation5 + $0x150] ss:$8 sps:$4 sm:$0xff]  }
 0x17a   :  { %1121 = vmatpush2.bf16.msra.mxu1 %v3956_v14  ;;  %1432 = vmatpush1.bf16.msra.mxu0 %v4171_v44  ;;  %v4243_v14 = vld [vmem:[#allocation5 + $0xd8] ss:$8 sps:$4 sm:$0xff]  }
 0x17b   :  { %1122 = vmatprep.subr.bf16.mxu1 %v4658_v30  ;;  %1433 = vmatprep.subr.bf16.mxu0 %v4176_v46  ;;  %v583_v30 = vld [vmem:[%s4601_s4] sm:$0x3] }
 0x17e   :  { %1123 = vmatpush2.bf16.msra.mxu1 %v4659_v32  ;;  %1434 = vmatpush1.bf16.msra.mxu0 %v4181_v47  ;;  %v4670_v32 = vld [vmem:[#allocation21_spill] sm:$0xff] }
 0x17f   :  { %1124 = vmatprep.subr.bf16.mxu1 %v4660_v33  ;;  %1435 = vmatprep.subr.bf16.mxu0 %v4185_v48  ;;  %v4315_v33 = vrot.slane %v583_v30, %v4670_v32 }
 0x182   :  { %1125 = vmatpush2.bf16.msra.mxu1 %v4661_v34  ;;  %1436 = vmatpush1.bf16.msra.mxu0 %v4191_v50 }
 0x183   :  { %1178 = vmatprep.subr.bf16.mxu1 %v4662_v35  ;;  %1437 = vmatprep.subr.bf16.mxu0 %v4197_v52 }
 0x185   :  { %1127 = vmatmul.mubr.bf16.vlgmr.msra.gmra.mxu1 %v516_v29 }
 0x186   :  { %1179 = vmatpush1.bf16.msra.mxu1 %v3990_v25  ;;  %2978 = vmatprep.mubr.msk.bf16.mxu1 %vm689_vm3, %v4019_v12  ;;  %v4246_v25 = vcombine.high %v1312_v9, %v1312_v9  ;;  %v2999_v12 = vcombine.low %v1312_v9, %v1312_v9 }
 0x187   :  { %1180 = vmatprep.subr.bf16.mxu1 %v4663_v36  ;;  %1438 = vmatpush1.bf16.msra.mxu0 %v4204_v60  ;;  %v4671_v36 = vld [vmem:[#allocation22_spill] sm:$0xff] }
 0x188   :  { %1439 = vmatprep.subr.bf16.mxu0 %v4210_v62 }
 0x18a   :  { %1181 = vmatpush1.bf16.msra.mxu1 %v4000_v17  ;;  %v4253_v17 = vld [vmem:[#allocation5 + $0xc8] ss:$8 sps:$4 sm:$0xff]  }
 0x18b   :  { %1182 = vmatprep.subr.bf16.mxu1 %v4664_v37  ;;  %1440 = vmatpush1.bf16.msra.mxu0 %v4216_v0  ;;  %v4318_v37 = vrot.slane %v583_v30, %v4671_v36  ;;  %v4335_v30 = vld [vmem:[#allocation5 + $0x50] ss:$8 sps:$4 sm:$0xff]  }
 0x18c   :  { %1441 = vmatprep.subr.bf16.mxu0 %v4222_v2  ;;  %4674 = vst [vmem:[#allocation20_spill] sm:$0xff] %v4335_v30 }
 0x18e   :  { %1183 = vmatpush1.bf16.msra.mxu1 %v4006_v56  ;;  %v4258_v56 = vld [vmem:[#allocation5 + $0xbc] ss:$8 sps:$4 sm:$0xff]  }
 0x18f   :  { %1184 = vmatprep.subr.bf16.mxu1 %v4009_v8  ;;  %1442 = vmatpush1.bf16.msra.mxu0 %v4228_v4  ;;  %v4261_v8 = vsel %vm143_vm0, %v2999_v12, 0 }
 0x190   :  { %1443 = vmatprep.subr.bf16.mxu0 %v4234_v6 }
 0x192   :  { %1185 = vmatpush1.bf16.msra.mxu1 %v4014_v15  ;;  %v4265_v15 = vld [vmem:[#allocation5 + $0xb8] ss:$8 sps:$4 sm:$0xff]  }
 0x193   :  { %1186 = vmatprep.subr.bf16.mxu1 %v4017_v57  ;;  %1444 = vmatpush1.bf16.msra.mxu0 %v4240_v13  ;;  %v4267_v57 = vld [vmem:[#allocation5 + $0x1e4] ss:$8 sps:$4 sm:$0xff]  }
 0x194   :  { %3001 = vmatprep.subr.msk.bf16.mxu0 %vm143_vm0, %v4246_v25 }
 0x196   :  { %1187 = vmatpush1.bf16.msra.mxu1 %v4022_v20  ;;  %v4270_v20 = vld [vmem:[#allocation5 + $0xac] ss:$8 sps:$4 sm:$0xff]  }
 0x197   :  { %1188 = vmatprep.subr.bf16.mxu1 %v4029_v21  ;;  %1456 = vmatpush2.bf16.msra.mxu0 %v4261_v8  ;;  %v4277_v21 = vld [vmem:[#allocation5 + $0xa8] ss:$8 sps:$4 sm:$0xff]  }
 0x198   :  { %1457 = vmatprep.subr.bf16.mxu0 %v4267_v57 }
 0x19a   :  { %1189 = vmatpush1.bf16.msra.mxu1 %v4665_v38 }
 0x19b   :  { %1190 = vmatprep.subr.bf16.mxu1 %v4666_v39 }
 0x19e   :  { %1191 = vmatpush1.bf16.msra.mxu1 %v4667_v40 }
 0x19f   :  { %1192 = vmatprep.subr.bf16.mxu1 %v4051_v24 }
 0x1a2   :  { %1193 = vmatpush1.bf16.msra.mxu1 %v4055_v23  ;;  %v4295_v23 = vld [vmem:[#allocation5 + $0x13c] ss:$8 sps:$4 sm:$0xff]  }
 0x1a3   :  { %1204 = vmatprep.subr.bf16.mxu1 %v4668_v43 }
 0x1a6   :  { %1205 = vmatpush2.bf16.msra.mxu1 %v4065_v27  ;;  %v3023_v27 = vcombine.low %v1290_v55, %v1290_v55 }
 0x1a7   :  { %1206 = vmatprep.subr.bf16.mxu1 %v4069_v19  ;;  %v4284_v19 = vld [vmem:[#allocation5 + $0x1d0] ss:$8 sps:$4 sm:$0xff]  }
 0x1a8   :  { %v4293_v24 = vsel %vm143_vm0, %v3023_v27, 0 }
 0x1aa   :  { %1207 = vmatpush2.bf16.msra.mxu1 %v4074_v26  ;;  %v4301_v26 = vld [vmem:[#allocation5 + $0x12c] ss:$8 sps:$4 sm:$0xff]  }
 0x1ab   :  { %1208 = vmatprep.subr.bf16.mxu1 %v4078_v59  ;;  %v4304_v59 = vld [vmem:[#allocation5 + $0x128] ss:$8 sps:$4 sm:$0xff]  }
 0x1ae   :  { %1209 = vmatpush2.bf16.msra.mxu1 %v4083_v18  ;;  %v4282_v18 = vcombine.high %v1290_v55, %v1290_v55 }
 0x1af   :  { %1584 = vmatprep.subr.bf16.mxu1 %v4188_v49 }
 0x1b1   :  { %1211 = vmatmul.mubr.bf16.vlgmr.msra.gmra.mxu1 %v4024_v31  ;;  %v4272_v31 = vld [vmem:[#allocation5 + $0x1e0] ss:$8 sps:$4 sm:$0xff]  }
 0x1b2   :  { %1585 = vmatpush1.bf16.msra.mxu1 %v4194_v51  ;;  %1458 = vmatpush2.bf16.msra.mxu0 %v4272_v31 }
 0x1b3   :  { %1586 = vmatprep.subr.bf16.mxu1 %v4200_v58  ;;  %1459 = vmatprep.subr.bf16.mxu0 %v4279_v22 }
 0x1b6   :  { %1587 = vmatpush1.bf16.msra.mxu1 %v4207_v61  ;;  %1460 = vmatpush2.bf16.msra.mxu0 %v4284_v19 }
 0x1b7   :  { %1588 = vmatprep.subr.bf16.mxu1 %v4213_v63  ;;  %1625 = vmatprep.subr.bf16.mxu0 %v4188_v49 }
 0x1ba   :  { %1589 = vmatpush1.bf16.msra.mxu1 %v4219_v1 }
 0x1bb   :  { %1590 = vmatprep.subr.bf16.mxu1 %v4225_v3 }
 0x1be   :  { %1591 = vmatpush1.bf16.msra.mxu1 %v4231_v5 }
 0x1bf   :  { %1592 = vmatprep.subr.bf16.mxu1 %v4237_v7 }
 0x1c2   :  { %1593 = vmatpush1.bf16.msra.mxu1 %v4243_v14 }
 0x1c3   :  { %1594 = vmatprep.subr.bf16.mxu1 %v4249_v11 }
 0x1c6   :  { %1595 = vmatpush1.bf16.msra.mxu1 %v4253_v17 }
 0x1c7   :  { %1596 = vmatprep.subr.bf16.mxu1 %v4258_v56 }
 0x1ca   :  { %1597 = vmatpush1.bf16.msra.mxu1 %v4265_v15 }
 0x1cb   :  { %1598 = vmatprep.subr.bf16.mxu1 %v4270_v20 }
 0x1ce   :  { %1599 = vmatpush1.bf16.msra.mxu1 %v4277_v21 }
 0x1cf   :  { %3025 = vmatprep.subr.msk.bf16.mxu1 %vm143_vm0, %v4282_v18 }
 0x1d2   :  { %1611 = vmatpush2.bf16.msra.mxu1 %v4293_v24 }
 0x1d3   :  { %1612 = vmatprep.subr.bf16.mxu1 %v4295_v23 }
 0x1d6   :  { %1613 = vmatpush2.bf16.msra.mxu1 %v4298_v53 }
 0x1d7   :  { %1614 = vmatprep.subr.bf16.mxu1 %v4301_v26 }
 0x1da   :  { %1615 = vmatpush2.bf16.msra.mxu1 %v4304_v59 }
 0x1db   :  { %1777 = vmatprep.subr.bf16.mxu1 %v4307_v54  ;;  %v4324_v54 = vld [vmem:[#allocation5 + $0x64] ss:$8 sps:$4 sm:$0xff]  }
 0x1dd   :  { %v891_v16 = vpop.f32.mrf.mxu0 }
 0x1df   :  { %v893_v10 = vpop.f32.mrf.mxu0 }
 0x1e1   :  { %v895_v28 = vpop.f32.mrf.mxu0 }
 0x1e3   :  { %v896_v29 = vpop.f32.mrf.mxu0 }
 0x1e4   :  { %v4322_v29 = vld [vmem:[#allocation5 + $0x70] ss:$8 sps:$4 sm:$0xff]  }
 0x1ed   :  { %v736_v34 = vpop.f32.mrf.mxu1 }
 0x1ee   :  { %v892_v35 = vadd.f32 %v891_v16, %v736_v34  ;;  %v4329_v16 = vld [vmem:[#allocation5 + $0x60] ss:$8 sps:$4 sm:$0xff]   ;;  %v4338_v34 = vld [vmem:[#allocation5 + $0x44] ss:$8 sps:$4 sm:$0xff]  }
 0x1ef   :  { %v738_v38 = vpop.f32.mrf.mxu1  ;;  %4672 = vst [vmem:[#allocation18_spill] sm:$0xff] %v4329_v16  ;;  %4675 = vst [vmem:[#allocation16_spill] sm:$0xff] %v4338_v34 }
 0x1f0   :  { %v1230_v39 = vadd.f32 %v4315_v33, %v892_v35  ;;  %v894_v40 = vadd.f32 %v893_v10, %v738_v38  ;;  %v4332_v10 = vld [vmem:[#allocation5 + $0x54] ss:$8 sps:$4 sm:$0xff]   ;;  %v4341_v35 = vld [vmem:[#allocation5 + $0x40] ss:$8 sps:$4 sm:$0xff]  }
 0x1f1   :  { %v740_v43 = vpop.f32.mrf.mxu1  ;;  %4673 = vst [vmem:[#allocation19_spill] sm:$0xff] %v4332_v10  ;;  %4676 = vst [vmem:[#allocation23_spill] sm:$0xff] %v4341_v35  ;;  %v4344_v38 = vld [vmem:[#allocation5 + $0x34] ss:$8 sps:$4 sm:$0xff]  }
 0x1f2   :  { %v1231_v9 = vadd.f32 %v4318_v37, %v894_v40  ;;  %v1232_v12 = vmax.f32 %v1230_v39, 0.0  ;;  %4677 = vst [vmem:[#allocation24_spill] sm:$0xff] %v4344_v38  ;;  %v4347_v39 = vld [vmem:[#allocation5 + $0x30] ss:$8 sps:$4 sm:$0xff]   ;;  %v4350_v40 = vld [vmem:[#allocation5 + $0x24] ss:$8 sps:$4 sm:$0xff]  }
 0x1f3   :  { %v741_v55 = vpop.f32.mrf.mxu1  ;;  %4678 = vst [vmem:[#allocation25_spill] sm:$0xff] %v4347_v39  ;;  %4679 = vst [vmem:[#allocation26_spill] sm:$0xff] %v4350_v40 }
 0x1f4   :  { %v1233_v27 = vmax.f32 %v1231_v9, 0.0  ;;  %v1234_v32 = vpack.c.bf16 %v1232_v12, %v1232_v12  ;;  %v4353_v9 = vld [vmem:[#allocation5 + $0x20] ss:$8 sps:$4 sm:$0xff]   ;;  %v4356_v55 = vld [vmem:[#allocation5 + $0x14] ss:$8 sps:$4 sm:$0xff]  }
 0x1f5   :  { %4680 = vst [vmem:[#allocation27_spill] sm:$0xff] %v4353_v9  ;;  %4681 = vst [vmem:[#allocation28_spill] sm:$0xff] %v4356_v55 }
 0x1f6   :  { %v1235_v28 = vpack.c.bf16 %v1233_v27, %v1233_v27 }
 0x1f8   :  { %3026 = vmatprep.mubr.msk.bf16.mxu1 %vm1419_vm4, %v1235_v28 }
 0x1f9   :  { %1617 = vmatmul.mubr.bf16.vlgmr.msra.gmra.mxu1 %v1234_v32 }
 0x1fa   :  { %1778 = vmatpush1.bf16.msra.mxu1 %v4322_v29  ;;  %3052 = vmatprep.mubr.msk.bf16.mxu1 %vm1419_vm4, %v1235_v28  ;;  %v4359_v28 = vld [vmem:[#allocation5 + $0x10] ss:$8 sps:$4 sm:$0xff]  }
 0x1fb   :  { %1779 = vmatprep.subr.bf16.mxu1 %v4324_v54  ;;  %4682 = vst [vmem:[#allocation29_spill] sm:$0xff] %v4359_v28 }
 0x1fe   :  { %1780 = vmatpush1.bf16.msra.mxu1 %v4329_v16 }
 0x1ff   :  { %1781 = vmatprep.subr.bf16.mxu1 %v4332_v10 }
 0x202   :  { %1782 = vmatpush1.bf16.msra.mxu1 %v4335_v30 }
 0x203   :  { %1783 = vmatprep.subr.bf16.mxu1 %v4338_v34 }
 0x206   :  { %1784 = vmatpush1.bf16.msra.mxu1 %v4341_v35  ;;  %v1268_v35 = vld [vmem:[#allocation5 + $0xa0] sm:$0x11] }
 0x207   :  { %1785 = vmatprep.subr.bf16.mxu1 %v4344_v38  ;;  %v4362_v38 = vld [vmem:[#allocation5 + $0x4] ss:$8 sps:$4 sm:$0xff]   ;;  %v3049_v34 = vcombine.low %v1268_v35, %v1268_v35 }
 0x208   :  { %4683 = vst [vmem:[#allocation30_spill] sm:$0xff] %v4362_v38 }
 0x209   :  { %v1084_v43 = vpop.f32.mrf.mxu0 }
 0x20a   :  { %1786 = vmatpush1.bf16.msra.mxu1 %v4347_v39  ;;  %v4365_v39 = vld [vmem:[#allocation5] ss:$8 sps:$4 sm:$0xff]  }
 0x20b   :  { %v1086_v12 = vpop.f32.mrf.mxu0  ;;  %1787 = vmatprep.subr.bf16.mxu1 %v4350_v40  ;;  %4684 = vst [vmem:[#allocation31_spill] sm:$0xff] %v4365_v39  ;;  %v4368_v40 = vcombine.high %v1268_v35, %v1268_v35 }
 0x20d   :  { %v1088_v27 = vpop.f32.mrf.mxu0  ;;  %4685 = vst [vmem:[#allocation32_spill] sm:$0xff] %v4368_v40 }
 0x20e   :  { %1788 = vmatpush1.bf16.msra.mxu1 %v4353_v9  ;;  %v4376_v27 = vld [vmem:[#allocation5 + $0x94] ss:$8 sps:$4 sm:$0xff]  }
 0x20f   :  { %v1089_v36 = vpop.f32.mrf.mxu0  ;;  %1789 = vmatprep.subr.bf16.mxu1 %v4356_v55  ;;  %4687 = vst [vmem:[#allocation34_spill] sm:$0xff] %v4376_v27 }
 0x210   :  { %v4374_v36 = vsel %vm143_vm0, %v3049_v34, 0 }
 0x211   :  { %4686 = vst [vmem:[#allocation33_spill] sm:$0xff] %v4374_v36 }
 0x212   :  { %1790 = vmatpush1.bf16.msra.mxu1 %v4359_v28  ;;  %v4379_v28 = vld [vmem:[#allocation5 + $0x90] ss:$8 sps:$4 sm:$0xff]  }
 0x213   :  { %1791 = vmatprep.subr.bf16.mxu1 %v4362_v38  ;;  %4688 = vst [vmem:[#allocation35_spill] sm:$0xff] %v4379_v28  ;;  %v4382_v38 = vld [vmem:[#allocation5 + $0x84] ss:$8 sps:$4 sm:$0xff]  }
 0x214   :  { %4689 = vst [vmem:[#allocation36_spill] sm:$0xff] %v4382_v38 }
 0x216   :  { %1792 = vmatpush1.bf16.msra.mxu1 %v4365_v39  ;;  %v4385_v39 = vld [vmem:[#allocation5 + $0x80] ss:$8 sps:$4 sm:$0xff]  }
 0x217   :  { %3051 = vmatprep.subr.msk.bf16.mxu1 %vm143_vm0, %v4368_v40  ;;  %4690 = vst [vmem:[#allocation37_spill] sm:$0xff] %v4385_v39 }
 0x219   :  { %v932_v55 = vpop.f32.mrf.mxu1 }
 0x21a   :  { %1804 = vmatpush2.bf16.msra.mxu1 %v4374_v36 }
 0x21b   :  { %v934_v9 = vpop.f32.mrf.mxu1  ;;  %1805 = vmatprep.subr.bf16.mxu1 %v4376_v27 }
 0x21d   :  { %v936_v35 = vpop.f32.mrf.mxu1 }
 0x21e   :  { %1806 = vmatpush2.bf16.msra.mxu1 %v4379_v28  ;;  %v1085_v35 = vadd.f32 %v1084_v43, %v932_v55  ;;  %v4710_v55 = vld [vmem:[#allocation36_spill] sm:$0xff] }
 0x21f   :  { %v937_v40 = vpop.f32.mrf.mxu1  ;;  %1807 = vmatprep.subr.bf16.mxu1 %v4382_v38  ;;  %v1087_v38 = vadd.f32 %v1086_v12, %v934_v9  ;;  %v3479_v12 = vld [vmem:[#allocation8 + $0x1d4] ss:$8 sps:$4 sm:$0x3f]  }
 0x222   :  { %1808 = vmatpush2.bf16.msra.mxu1 %v4385_v39 }
 0x223   :  { %1864 = vmatprep.subr.bf16.mxu1 %v4188_v49 }
 0x225   :  { %1810 = vmatmul.mubr.bf16.vlgmr.msra.gmra.mxu1 %v1234_v32 }
 0x226   :  { %1865 = vmatpush1.bf16.msra.mxu1 %v4194_v51 }
 0x227   :  { %1866 = vmatprep.subr.bf16.mxu1 %v4200_v58 }
 0x22a   :  { %1867 = vmatpush1.bf16.msra.mxu1 %v4207_v61 }
 0x22b   :  { %1868 = vmatprep.subr.bf16.mxu1 %v4213_v63 }
 0x22e   :  { %1869 = vmatpush1.bf16.msra.mxu1 %v4219_v1 }
 0x22f   :  { %1870 = vmatprep.subr.bf16.mxu1 %v4225_v3 }
 0x232   :  { %1871 = vmatpush1.bf16.msra.mxu1 %v4231_v5 }
 0x233   :  { %1872 = vmatprep.subr.bf16.mxu1 %v4237_v7 }
 0x235   :  { %v1171_v34 = vpop.f32.mrf.mxu0 }
 0x236   :  { %1873 = vmatpush1.bf16.msra.mxu1 %v4243_v14 }
 0x237   :  { %v1173_v49 = vpop.f32.mrf.mxu0  ;;  %1874 = vmatprep.subr.bf16.mxu1 %v4249_v11 }
 0x239   :  { %v1175_v32 = vpop.f32.mrf.mxu0 }
 0x23a   :  { %1875 = vmatpush1.bf16.msra.mxu1 %v4253_v17 }
 0x23b   :  { %v1176_v40 = vpop.f32.mrf.mxu0  ;;  %1876 = vmatprep.subr.bf16.mxu1 %v4258_v56 }
 0x23e   :  { %1877 = vmatpush1.bf16.msra.mxu1 %v4265_v15 }
 0x23f   :  { %1878 = vmatprep.subr.bf16.mxu1 %v4270_v20 }
 0x242   :  { %1879 = vmatpush1.bf16.msra.mxu1 %v4277_v21 }
 0x243   :  { %3055 = vmatprep.subr.msk.bf16.mxu1 %vm143_vm0, %v4282_v18 }
 0x245   :  { %v1128_v39 = vpop.f32.mrf.mxu1 }
 0x246   :  { %v1135_v28 = vadd.f32 %v1128_v39, %v1085_v35  ;;  %1891 = vmatpush2.bf16.msra.mxu1 %v4293_v24  ;;  %v3408_v35 = vld [vmem:[#allocation8 + $0x70] ss:$8 sps:$4 sm:$0xff]  }
 0x247   :  { %v1130_v32 = vpop.f32.mrf.mxu1  ;;  %1892 = vmatprep.subr.bf16.mxu1 %v4295_v23 }
 0x248   :  { %v1236_v40 = vadd.f32 %v4315_v33, %v1135_v28  ;;  %v1136_v27 = vadd.f32 %v1130_v32, %v1087_v38  ;;  %v3476_v38 = vld [vmem:[#allocation8 + $0xf4] ss:$8 sps:$4 sm:$0xff]  }
 0x249   :  { %v1132_v36 = vpop.f32.mrf.mxu1  ;;  %v3410_v28 = vld [vmem:[#allocation8 + $0x74] ss:$8 sps:$4 sm:$0xff]  }
 0x24a   :  { %v1237_v30 = vadd.f32 %v4318_v37, %v1136_v27  ;;  %1893 = vmatpush2.bf16.msra.mxu1 %v4298_v53  ;;  %v1238_v10 = vmax.f32 %v1236_v40, 0.0  ;;  %v3474_v27 = vld [vmem:[#allocation8 + $0xf0] ss:$8 sps:$4 sm:$0xff]   ;;  %v3413_v40 = vld [vmem:[#allocation8 + $0x64] ss:$8 sps:$4 sm:$0xff]  }
 0x24b   :  { %v1133_v16 = vpop.f32.mrf.mxu1  ;;  %1894 = vmatprep.subr.bf16.mxu1 %v4301_v26 }
 0x24c   :  { %v1239_v43 = vmax.f32 %v1237_v30, 0.0  ;;  %v4416_v39 = vpack.c.bf16 %v1238_v10, %v1238_v10  ;;  %v4708_v16 = vld [vmem:[#allocation35_spill] sm:$0xff]  ;;  %v4709_v10 = vmov 65535  }
 0x24d   :  { %v2190_v30 = vsel %vm2188_vm5, 4294967295, %v4709_v10 }
 0x24e   :  { %v4413_v9 = vpack.c.bf16 %v1239_v43, %v1239_v43  ;;  %1895 = vmatpush2.bf16.msra.mxu1 %v4304_v59  ;;  %v4502_v36 = vsel %vm2189_vm6, %v2190_v30, 0 }
 0x24f   :  { %v2196_v32 = vand.u32 %v3479_v12, %v4502_v36  ;;  %v4713_v12 = vld [vmem:[#allocation22_spill] sm:$0xff] }
 0x250   :  { %3002 = vmatprep.mubr.msk.bf16.mxu0 %vm1419_vm4, %v4413_v9 }
 0x251   :  { %1462 = vmatmul.mubr.bf16.vlgmr.msra.gmra.mxu0 %v4416_v39 }
 0x252   :  { %1626 = vmatpush1.bf16.msra.mxu0 %v4194_v51  ;;  %3028 = vmatprep.mubr.msk.bf16.mxu0 %vm1419_vm4, %v4413_v9 }
 0x253   :  { %1627 = vmatprep.subr.bf16.mxu0 %v4200_v58 }
 0x256   :  { %1628 = vmatpush1.bf16.msra.mxu0 %v4207_v61 }
 0x257   :  { %1629 = vmatprep.subr.bf16.mxu0 %v4213_v63 }
 0x25a   :  { %1630 = vmatpush1.bf16.msra.mxu0 %v4219_v1 }
 0x25b   :  { %1631 = vmatprep.subr.bf16.mxu0 %v4225_v3 }
 0x25e   :  { %1632 = vmatpush1.bf16.msra.mxu0 %v4231_v5 }
 0x25f   :  { %1633 = vmatprep.subr.bf16.mxu0 %v4237_v7 }
 0x262   :  { %1634 = vmatpush1.bf16.msra.mxu0 %v4243_v14 }
 0x263   :  { %1635 = vmatprep.subr.bf16.mxu0 %v4249_v11 }
 0x266   :  { %1636 = vmatpush1.bf16.msra.mxu0 %v4253_v17 }
 0x267   :  { %1637 = vmatprep.subr.bf16.mxu0 %v4258_v56 }
 0x26a   :  { %1638 = vmatpush1.bf16.msra.mxu0 %v4265_v15 }
 0x26b   :  { %1639 = vmatprep.subr.bf16.mxu0 %v4270_v20  ;;  %v3459_v20 = vld [vmem:[#allocation8 + $0x140] ss:$8 sps:$4 sm:$0xff]  }
 0x26e   :  { %1640 = vmatpush1.bf16.msra.mxu0 %v4277_v21  ;;  %v3464_v21 = vld [vmem:[#allocation8 + $0x134] ss:$8 sps:$4 sm:$0xff]  }
 0x26f   :  { %3027 = vmatprep.subr.msk.bf16.mxu0 %vm143_vm0, %v4282_v18  ;;  %v3462_v18 = vld [vmem:[#allocation8 + $0x130] ss:$8 sps:$4 sm:$0xff]  }
 0x271   :  { %v1212_v51 = vpop.f32.mrf.mxu1 }
 0x272   :  { %v1213_v58 = vadd.f32 %v1212_v51, %v1171_v34  ;;  %1652 = vmatpush2.bf16.msra.mxu0 %v4293_v24  ;;  %v3465_v24 = vld [vmem:[#allocation8 + $0x120] ss:$8 sps:$4 sm:$0xff]   ;;  %v3477_v34 = vld [vmem:[#allocation8 + $0x1d0] ss:$8 sps:$4 sm:$0x3f]  }
 0x273   :  { %v1214_v61 = vpop.f32.mrf.mxu1  ;;  %1653 = vmatprep.subr.bf16.mxu0 %v4295_v23  ;;  %v4704_v23 = vld [vmem:[#allocation31_spill] sm:$0xff]  ;;  %v2193_v43 = vand.u32 %v3477_v34, %v4502_v36  ;;  %v3482_v51 = vld [vmem:[#allocation8 + $0x1c4] ss:$8 sps:$4 sm:$0xff]  }
 0x274   :  { %v1242_v63 = vadd.f32 %v4315_v33, %v1213_v58  ;;  %v1215_v1 = vadd.f32 %v1214_v61, %v1173_v49  ;;  %v3473_v33 = vld [vmem:[#allocation8 + $0x104] ss:$8 sps:$4 sm:$0xff]   ;;  %v3416_v58 = vld [vmem:[#allocation8 + $0x54] ss:$8 sps:$4 sm:$0xff]   ;;  %v3480_v61 = vld [vmem:[#allocation8 + $0x1c0] ss:$8 sps:$4 sm:$0xff]  }
 0x275   :  { %v1216_v3 = vpop.f32.mrf.mxu1  ;;  %v4711_v49 = vld [vmem:[#allocation37_spill] sm:$0xff] }
 0x276   :  { %v1243_v5 = vadd.f32 %v4318_v37, %v1215_v1  ;;  %1654 = vmatpush2.bf16.msra.mxu0 %v4298_v53  ;;  %v1244_v7 = vmax.f32 %v1242_v63, 0.0  ;;  %v3470_v53 = vld [vmem:[#allocation8 + $0x114] ss:$8 sps:$4 sm:$0xff]   ;;  %v4707_v37 = vld [vmem:[#allocation34_spill] sm:$0xff] }
 0x277   :  { %v1217_v14 = vpop.f32.mrf.mxu1  ;;  %1655 = vmatprep.subr.bf16.mxu0 %v4301_v26  ;;  %v4705_v26 = vld [vmem:[#allocation32_spill] sm:$0xff]  ;;  %v3419_v3 = vld [vmem:[#allocation8 + $0x44] ss:$8 sps:$4 sm:$0xff]  }
 0x278   :  { %v1245_v11 = vmax.f32 %v1243_v5, 0.0  ;;  %v1246_v56 = vpack.c.bf16 %v1244_v7, %v1244_v7  ;;  %v3414_v63 = vld [vmem:[#allocation8 + $0x50] ss:$8 sps:$4 sm:$0xff]   ;;  %v3485_v1 = vld [vmem:[#allocation8 + $0x1b4] ss:$8 sps:$4 sm:$0xff]  }
 0x279   :  { %v3483_v5 = vld [vmem:[#allocation8 + $0x1b0] ss:$8 sps:$4 sm:$0xff]   ;;  %v3488_v7 = vld [vmem:[#allocation8 + $0x1a4] ss:$8 sps:$4 sm:$0xff]   ;;  %v3422_v14 = vld [vmem:[#allocation8 + $0x34] ss:$8 sps:$4 sm:$0xff]  }
 0x27a   :  { %v1247_v17 = vpack.c.bf16 %v1245_v11, %v1245_v11  ;;  %1656 = vmatpush2.bf16.msra.mxu0 %v4304_v59  ;;  %v3468_v59 = vld [vmem:[#allocation8 + $0x110] ss:$8 sps:$4 sm:$0xff]   ;;  %v3486_v11 = vld [vmem:[#allocation8 + $0x1a0] ss:$8 sps:$4 sm:$0xff]  }
 0x27b   :  { %1821 = vmatprep.subr.bf16.mxu0 %v4166_v42  ;;  %v3455_v42 = vld [vmem:[#allocation8 + $0x164] ss:$8 sps:$4 sm:$0xff]  }
 0x27c   :  { %3056 = vmatprep.mubr.msk.bf16.mxu1 %vm1419_vm4, %v1247_v17  ;;  %2198 = vmatprep.subr.bf16.mxu1 %v3455_v42 }
 0x27d   :  { %1658 = vmatmul.mubr.bf16.vlgmr.msra.gmra.mxu0 %v4416_v39  ;;  %1897 = vmatmul.mubr.bf16.vlgmr.msra.gmra.mxu1 %v1246_v56 }
 0x27e   :  { %1822 = vmatpush1.bf16.msra.mxu0 %v4164_v41  ;;  %3054 = vmatprep.mubr.msk.bf16.mxu0 %vm1419_vm4, %v1247_v17  ;;  %v3453_v41 = vld [vmem:[#allocation8 + $0x160] ss:$8 sps:$4 sm:$0xff]   ;;  %v3420_v17 = vld [vmem:[#allocation8 + $0x30] ss:$8 sps:$4 sm:$0xff]  }
 0x27f   :  { %1823 = vmatprep.subr.bf16.mxu0 %v4173_v45  ;;  %2199 = vmatpush1.bf16.msra.mxu1 %v3453_v41  ;;  %v3456_v45 = vld [vmem:[#allocation8 + $0x150] ss:$8 sps:$4 sm:$0xff]   ;;  %v3425_v41 = vld [vmem:[#allocation8 + $0x24] ss:$8 sps:$4 sm:$0xff]  }
 0x282   :  { %1824 = vmatpush1.bf16.msra.mxu0 %v4171_v44  ;;  %v3458_v44 = vld [vmem:[#allocation8 + $0x154] ss:$8 sps:$4 sm:$0xff]  }
 0x283   :  { %1825 = vmatprep.subr.bf16.mxu0 %v4176_v46  ;;  %2200 = vmatprep.subr.bf16.mxu1 %v3458_v44  ;;  %v4691_v46 = vld [vmem:[#allocation17_spill] sm:$0xff]  ;;  %v3489_v44 = vld [vmem:[#allocation8 + $0x190] ss:$8 sps:$4 sm:$0xff]  }
 0x284   :  { %2201 = vmatpush1.bf16.msra.mxu1 %v3456_v45  ;;  %v3423_v45 = vld [vmem:[#allocation8 + $0x20] ss:$8 sps:$4 sm:$0xff]  }
 0x286   :  { %1826 = vmatpush1.bf16.msra.mxu0 %v4181_v47  ;;  %v4692_v47 = vld [vmem:[#allocation18_spill] sm:$0xff] }
 0x287   :  { %1827 = vmatprep.subr.bf16.mxu0 %v4185_v48  ;;  %v4693_v48 = vld [vmem:[#allocation19_spill] sm:$0xff] }
 0x28a   :  { %1828 = vmatpush1.bf16.msra.mxu0 %v4191_v50  ;;  %v4694_v50 = vld [vmem:[#allocation20_spill] sm:$0xff] }
 0x28b   :  { %1829 = vmatprep.subr.bf16.mxu0 %v4197_v52  ;;  %v4695_v52 = vld [vmem:[#allocation16_spill] sm:$0xff] }
 0x28e   :  { %1830 = vmatpush1.bf16.msra.mxu0 %v4204_v60  ;;  %v4696_v60 = vld [vmem:[#allocation23_spill] sm:$0xff] }
 0x28f   :  { %1831 = vmatprep.subr.bf16.mxu0 %v4210_v62  ;;  %v4697_v62 = vld [vmem:[#allocation24_spill] sm:$0xff] }
 0x292   :  { %1832 = vmatpush1.bf16.msra.mxu0 %v4216_v0 }
 0x293   :  { %1833 = vmatprep.subr.bf16.mxu0 %v4222_v2  ;;  %v4698_v2 = vld [vmem:[#allocation25_spill] sm:$0xff] }
 0x296   :  { %1834 = vmatpush1.bf16.msra.mxu0 %v4228_v4 }
 0x297   :  { %1835 = vmatprep.subr.bf16.mxu0 %v4234_v6  ;;  %v4699_v6 = vld [vmem:[#allocation26_spill] sm:$0xff] }
 0x29a   :  { %1836 = vmatpush1.bf16.msra.mxu0 %v4240_v13 }
 0x29b   :  { %3053 = vmatprep.subr.msk.bf16.mxu0 %vm143_vm0, %v4246_v25  ;;  %v4700_v25 = vld [vmem:[#allocation27_spill] sm:$0xff] }
 0x29e   :  { %1848 = vmatpush2.bf16.msra.mxu0 %v4261_v8  ;;  %v3461_v8 = vld [vmem:[#allocation8 + $0x144] ss:$8 sps:$4 sm:$0xff]  }
 0x29f   :  { %1849 = vmatprep.subr.bf16.mxu0 %v4267_v57  ;;  %v4701_v57 = vld [vmem:[#allocation28_spill] sm:$0xff]  ;;  %2202 = vmatprep.subr.bf16.mxu1 %v3461_v8 }
 0x2a0   :  { %2203 = vmatpush1.bf16.msra.mxu1 %v3459_v20  ;;  %v3497_v8 = vld [vmem:[#allocation8 + $0x174] ss:$8 sps:$4 sm:$0xff]  }
 0x2a1   :  { %2204 = vmatprep.subr.bf16.mxu1 %v3464_v21  ;;  %v3437_v21 = vld [vmem:[#allocation8 + $0xd4] ss:$8 sps:$4 sm:$0xff]  }
 0x2a2   :  { %1850 = vmatpush2.bf16.msra.mxu0 %v4272_v31  ;;  %v4702_v31 = vld [vmem:[#allocation29_spill] sm:$0xff] }
 0x2a3   :  { %1851 = vmatprep.subr.bf16.mxu0 %v4279_v22  ;;  %v4703_v22 = vld [vmem:[#allocation30_spill] sm:$0xff] }
 0x2a4   :  { %2205 = vmatpush1.bf16.msra.mxu1 %v3462_v18  ;;  %v3440_v18 = vld [vmem:[#allocation8 + $0xc4] ss:$8 sps:$4 sm:$0xff]  }
 0x2a6   :  { %1852 = vmatpush2.bf16.msra.mxu0 %v4284_v19  ;;  %v3467_v19 = vld [vmem:[#allocation8 + $0x124] ss:$8 sps:$4 sm:$0xff]  }
 0x2a7   :  { %1905 = vmatprep.subr.bf16.mxu0 %v4691_v46  ;;  %2206 = vmatprep.subr.bf16.mxu1 %v3467_v19  ;;  %v3438_v19 = vld [vmem:[#allocation8 + $0xc0] ss:$8 sps:$4 sm:$0xff]  }
 0x2a8   :  { %2207 = vmatpush1.bf16.msra.mxu1 %v3465_v24  ;;  %v3443_v24 = vld [vmem:[#allocation8 + $0xb4] ss:$8 sps:$4 sm:$0xff]  }
 0x2a9   :  { %1854 = vmatmul.mubr.bf16.vlgmr.msra.gmra.mxu0 %v1246_v56  ;;  %2208 = vmatprep.subr.bf16.mxu1 %v3470_v53  ;;  %v3491_v56 = vld [vmem:[#allocation8 + $0x194] ss:$8 sps:$4 sm:$0xff]   ;;  %v3446_v53 = vld [vmem:[#allocation8 + $0xa4] ss:$8 sps:$4 sm:$0xff]  }
 0x2aa   :  { %1906 = vmatpush1.bf16.msra.mxu0 %v4322_v29  ;;  %3058 = vmatprep.mubr.msk.bf16.mxu0 %vm1419_vm4, %v4413_v9  ;;  %v3471_v29 = vld [vmem:[#allocation8 + $0x100] ss:$8 sps:$4 sm:$0xff]  }
 0x2ab   :  { %1907 = vmatprep.subr.bf16.mxu0 %v4324_v54  ;;  %v4706_v54 = vld [vmem:[#allocation33_spill] sm:$0xff] }
 0x2ac   :  { %2209 = vmatpush1.bf16.msra.mxu1 %v3468_v59  ;;  %v3411_v9 = vld [vmem:[#allocation8 + $0x60] ss:$8 sps:$4 sm:$0xff]   ;;  %v3449_v59 = vld [vmem:[#allocation8 + $0x94] ss:$8 sps:$4 sm:$0xff]  }
 0x2ad   :  { %2210 = vmatprep.subr.bf16.mxu1 %v3473_v33  ;;  %v3452_v33 = vld [vmem:[#allocation8 + $0x84] ss:$8 sps:$4 sm:$0xff]  }
 0x2ae   :  { %1908 = vmatpush1.bf16.msra.mxu0 %v4692_v47  ;;  %v3428_v47 = vld [vmem:[#allocation8 + $0x14] ss:$8 sps:$4 sm:$0xff]  }
 0x2af   :  { %1909 = vmatprep.subr.bf16.mxu0 %v4693_v48 }
 0x2b0   :  { %2211 = vmatpush1.bf16.msra.mxu1 %v3471_v29  ;;  %v1313_v29 = vld [vmem:[#allocation7] sm:$0x3] }
 0x2b1   :  { %2212 = vmatprep.subr.bf16.mxu1 %v3476_v38 }
 0x2b2   :  { %1910 = vmatpush1.bf16.msra.mxu0 %v4694_v50  ;;  %v3426_v50 = vld [vmem:[#allocation8 + $0x10] ss:$8 sps:$4 sm:$0xff]  }
 0x2b3   :  { %1911 = vmatprep.subr.bf16.mxu0 %v4695_v52  ;;  %v3431_v52 = vld [vmem:[#allocation8 + $0x4] ss:$8 sps:$4 sm:$0xff]  }
 0x2b4   :  { %2213 = vmatpush1.bf16.msra.mxu1 %v3474_v27 }
 0x2b5   :  { %2216 = vmatprep.subr.bf16.mxu1 %v2196_v32 }
 0x2b6   :  { %1912 = vmatpush1.bf16.msra.mxu0 %v4696_v60  ;;  %v3494_v60 = vld [vmem:[#allocation8 + $0x184] ss:$8 sps:$4 sm:$0xff]  }
 0x2b7   :  { %1913 = vmatprep.subr.bf16.mxu0 %v4697_v62 }
 0x2b8   :  { %2217 = vmatpush2.bf16.msra.mxu1 %v2193_v43 }
 0x2b9   :  { %v4484_v0 = vpop.f32.mrf.mxu1  ;;  %2218 = vmatprep.subr.bf16.mxu1 %v3482_v51 }
 0x2ba   :  { %1914 = vmatpush1.bf16.msra.mxu0 %v4698_v2  ;;  %v3434_v2 = vld [vmem:[#allocation8 + $0xe4] ss:$8 sps:$4 sm:$0x3f]  }
 0x2bb   :  { %v4487_v4 = vpop.f32.mrf.mxu1  ;;  %1915 = vmatprep.subr.bf16.mxu0 %v4699_v6  ;;  %v3492_v6 = vld [vmem:[#allocation8 + $0x180] ss:$8 sps:$4 sm:$0xff]  }
 0x2bc   :  { %2219 = vmatpush2.bf16.msra.mxu1 %v3480_v61 }
 0x2bd   :  { %v1622_v13 = vpop.f32.mrf.mxu1  ;;  %2220 = vmatprep.subr.bf16.mxu1 %v3485_v1 }
 0x2be   :  { %1916 = vmatpush1.bf16.msra.mxu0 %v4700_v25  ;;  %v3429_v13 = vld [vmem:[#allocation8] ss:$8 sps:$4 sm:$0xff]  }
 0x2bf   :  { %v1623_v15 = vpop.f32.mrf.mxu1  ;;  %1917 = vmatprep.subr.bf16.mxu0 %v4701_v57  ;;  %v3432_v25 = vld [vmem:[#allocation8 + $0xe0] ss:$8 sps:$4 sm:$0x3f]   ;;  %v3495_v57 = vld [vmem:[#allocation8 + $0x170] ss:$8 sps:$4 sm:$0xff]  }
 0x2c0   :  { %2221 = vmatpush2.bf16.msra.mxu1 %v3483_v5  ;;  %v2394_v15 = vand.u32 %v3434_v2, %v4502_v36  ;;  %v2391_v20 = vand.u32 %v3432_v25, %v4502_v36  ;;  %v3503_v2 = vld [vmem:[#allocation8 + $0x244] ss:$8 sps:$4 sm:$0xff]   ;;  %v3507_v25 = vld [vmem:[#allocation8 + $0x220] ss:$8 sps:$4 sm:$0xff]  }
 0x2c1   :  { %2222 = vmatprep.subr.bf16.mxu1 %v3488_v7 }
 0x2c2   :  { %1918 = vmatpush1.bf16.msra.mxu0 %v4702_v31  ;;  %v3500_v31 = vld [vmem:[#allocation8 + $0x254] ss:$8 sps:$4 sm:$0xff]  }
 0x2c3   :  { %1919 = vmatprep.subr.bf16.mxu0 %v4703_v22  ;;  %v3435_v22 = vld [vmem:[#allocation8 + $0xd0] ss:$8 sps:$4 sm:$0xff]  }
 0x2c4   :  { %2223 = vmatpush2.bf16.msra.mxu1 %v3486_v11 }
 0x2c5   :  { %2224 = vmatprep.subr.bf16.mxu1 %v3491_v56 }
 0x2c6   :  { %1920 = vmatpush1.bf16.msra.mxu0 %v4704_v23  ;;  %v3441_v23 = vld [vmem:[#allocation8 + $0xb0] ss:$8 sps:$4 sm:$0xff]  }
 0x2c7   :  { %3057 = vmatprep.subr.msk.bf16.mxu0 %vm143_vm0, %v4705_v26  ;;  %v3444_v26 = vld [vmem:[#allocation8 + $0xa0] ss:$8 sps:$4 sm:$0xff]  }
 0x2c8   :  { %2225 = vmatpush2.bf16.msra.mxu1 %v3489_v44 }
 0x2c9   :  { %2226 = vmatprep.subr.bf16.mxu1 %v3494_v60  ;;  %v3498_v60 = vld [vmem:[#allocation8 + $0x250] ss:$8 sps:$4 sm:$0xff]  }
 0x2ca   :  { %1932 = vmatpush2.bf16.msra.mxu0 %v4706_v54  ;;  %v3447_v54 = vld [vmem:[#allocation8 + $0x90] ss:$8 sps:$4 sm:$0xff]  }
 0x2cb   :  { %1933 = vmatprep.subr.bf16.mxu0 %v4707_v37  ;;  %v3450_v37 = vld [vmem:[#allocation8 + $0x80] ss:$8 sps:$4 sm:$0xff]  }
 0x2cc   :  { %2227 = vmatpush2.bf16.msra.mxu1 %v3492_v6  ;;  %v3504_v6 = vld [vmem:[#allocation8 + $0x230] ss:$8 sps:$4 sm:$0xff]  }
 0x2cd   :  { %2228 = vmatprep.subr.bf16.mxu1 %v3497_v8  ;;  %v3512_v8 = vld [vmem:[#allocation8 + $0x214] ss:$8 sps:$4 sm:$0xff]  }
 0x2ce   :  { %1934 = vmatpush2.bf16.msra.mxu0 %v4708_v16  ;;  %v4712_v16 = vld [vmem:[#allocation21_spill] sm:$0xff] }
 0x2cf   :  { %1935 = vmatprep.subr.bf16.mxu0 %v4710_v55  ;;  %v4515_v10 = vrot.slane %v1313_v29, %v4712_v16  ;;  %v4519_v55 = vrot.slane %v1313_v29, %v4713_v12 }
 0x2d0   :  { %2229 = vmatpush2.bf16.msra.mxu1 %v3495_v57  ;;  %v3515_v57 = vld [vmem:[#allocation8 + $0x204] ss:$8 sps:$4 sm:$0xff]  }
 0x2d1   :  { %2625 = vmatprep.subr.bf16.mxu1 %v3500_v31  ;;  %v3518_v31 = vld [vmem:[#allocation8 + $0x1f4] ss:$8 sps:$4 sm:$0xff]  }
 0x2d2   :  { %1936 = vmatpush2.bf16.msra.mxu0 %v4711_v49 }
 0x2d3   :  { %2396 = vmatprep.subr.bf16.mxu0 %v3410_v28 }
 0x2d5   :  { %1938 = vmatmul.mubr.bf16.vlgmr.msra.gmra.mxu0 %v4416_v39  ;;  %v3417_v39 = vld [vmem:[#allocation8 + $0x40] ss:$8 sps:$4 sm:$0xff]  }
 0x2d6   :  { %2397 = vmatpush1.bf16.msra.mxu0 %v3408_v35 }
 0x2d7   :  { %2398 = vmatprep.subr.bf16.mxu0 %v3413_v40 }
 0x2da   :  { %2399 = vmatpush1.bf16.msra.mxu0 %v3411_v9 }
 0x2db   :  { %2400 = vmatprep.subr.bf16.mxu0 %v3416_v58 }
 0x2de   :  { %2401 = vmatpush1.bf16.msra.mxu0 %v3414_v63 }
 0x2df   :  { %2402 = vmatprep.subr.bf16.mxu0 %v3419_v3 }
 0x2e2   :  { %2403 = vmatpush1.bf16.msra.mxu0 %v3417_v39 }
 0x2e3   :  { %2404 = vmatprep.subr.bf16.mxu0 %v3422_v14 }
 0x2e5   :  { %v4508_v42 = vpop.f32.mrf.mxu1 }
 0x2e6   :  { %2405 = vmatpush1.bf16.msra.mxu0 %v3420_v17 }
 0x2e7   :  { %v4510_v46 = vpop.f32.mrf.mxu1  ;;  %2406 = vmatprep.subr.bf16.mxu0 %v3425_v41 }
 0x2e9   :  { %v1815_v48 = vpop.f32.mrf.mxu1 }
 0x2ea   :  { %2407 = vmatpush1.bf16.msra.mxu0 %v3423_v45 }
 0x2eb   :  { %v1816_v62 = vpop.f32.mrf.mxu1  ;;  %2408 = vmatprep.subr.bf16.mxu0 %v3428_v47 }
 0x2ee   :  { %2409 = vmatpush1.bf16.msra.mxu0 %v3426_v50 }
 0x2ef   :  { %2410 = vmatprep.subr.bf16.mxu0 %v3431_v52 }
 0x2f2   :  { %2411 = vmatpush1.bf16.msra.mxu0 %v3429_v13  ;;  %v3509_v13 = vld [vmem:[#allocation8 + $0x224] ss:$8 sps:$4 sm:$0xff]  }
 0x2f3   :  { %2414 = vmatprep.subr.bf16.mxu0 %v2394_v15  ;;  %v3510_v15 = vld [vmem:[#allocation8 + $0x210] ss:$8 sps:$4 sm:$0xff]  }
 0x2f6   :  { %2415 = vmatpush2.bf16.msra.mxu0 %v2391_v20  ;;  %v3513_v20 = vld [vmem:[#allocation8 + $0x200] ss:$8 sps:$4 sm:$0xff]  }
 0x2f7   :  { %2416 = vmatprep.subr.bf16.mxu0 %v3437_v21  ;;  %v3516_v21 = vld [vmem:[#allocation8 + $0x1f0] ss:$8 sps:$4 sm:$0xff]  }
 0x2fa   :  { %2417 = vmatpush2.bf16.msra.mxu0 %v3435_v22  ;;  %v3521_v22 = vld [vmem:[#allocation8 + $0x1e4] ss:$8 sps:$4 sm:$0xff]  }
 0x2fb   :  { %2418 = vmatprep.subr.bf16.mxu0 %v3440_v18  ;;  %v3524_v18 = vld [vmem:[#allocation8 + $0x2c4] ss:$8 sps:$4 sm:$0x3f]  }
 0x2fe   :  { %2419 = vmatpush2.bf16.msra.mxu0 %v3438_v19  ;;  %v3519_v19 = vld [vmem:[#allocation8 + $0x1e0] ss:$8 sps:$4 sm:$0xff]  }
 0x2ff   :  { %2420 = vmatprep.subr.bf16.mxu0 %v3443_v24  ;;  %v3522_v24 = vld [vmem:[#allocation8 + $0x2c0] ss:$8 sps:$4 sm:$0x3f]  }
 0x302   :  { %2421 = vmatpush2.bf16.msra.mxu0 %v3441_v23  ;;  %v2623_v23 = vand.u32 %v3524_v18, %v4502_v36 }
 0x303   :  { %2422 = vmatprep.subr.bf16.mxu0 %v3446_v53  ;;  %v2620_v53 = vand.u32 %v3522_v24, %v4502_v36 }
 0x306   :  { %2423 = vmatpush2.bf16.msra.mxu0 %v3444_v26  ;;  %v3527_v26 = vld [vmem:[#allocation8 + $0x2b4] ss:$8 sps:$4 sm:$0xff]  }
 0x307   :  { %2424 = vmatprep.subr.bf16.mxu0 %v3449_v59 }
 0x30a   :  { %2425 = vmatpush2.bf16.msra.mxu0 %v3447_v54  ;;  %v3525_v54 = vld [vmem:[#allocation8 + $0x2b0] ss:$8 sps:$4 sm:$0xff]  }
 0x30b   :  { %2426 = vmatprep.subr.bf16.mxu0 %v3452_v33 }
 0x30e   :  { %2427 = vmatpush2.bf16.msra.mxu0 %v3450_v37  ;;  %v3530_v37 = vld [vmem:[#allocation8 + $0x2a4] ss:$8 sps:$4 sm:$0xff]  }
 0x311   :  { %v1463_v30 = vpop.f32.mrf.mxu0 }
 0x312   :  { %v1619_v38 = vadd.f32 %v4484_v0, %v1463_v30 }
 0x313   :  { %v1465_v28 = vpop.f32.mrf.mxu0 }
 0x314   :  { %v1957_v27 = vadd.f32 %v4515_v10, %v1619_v38  ;;  %v1621_v34 = vadd.f32 %v4487_v4, %v1465_v28  ;;  %v3528_v28 = vld [vmem:[#allocation8 + $0x2a0] ss:$8 sps:$4 sm:$0xff]  }
 0x315   :  { %v1467_v49 = vpop.f32.mrf.mxu0 }
 0x316   :  { %v1958_v35 = vadd.f32 %v4519_v55, %v1621_v34  ;;  %v1959_v32 = vmax.f32 %v1957_v27, 0.0  ;;  %v3533_v34 = vld [vmem:[#allocation8 + $0x294] ss:$8 sps:$4 sm:$0xff]  }
 0x317   :  { %v1468_v40 = vpop.f32.mrf.mxu0 }
 0x318   :  { %v1960_v43 = vmax.f32 %v1958_v35, 0.0  ;;  %v1961_v51 = vpack.c.bf16 %v1959_v32, %v1959_v32  ;;  %v3531_v35 = vld [vmem:[#allocation8 + $0x290] ss:$8 sps:$4 sm:$0xff]   ;;  %v3536_v32 = vld [vmem:[#allocation8 + $0x284] ss:$8 sps:$4 sm:$0xff]  }
 0x319   :  { %v3534_v40 = vld [vmem:[#allocation8 + $0x280] ss:$8 sps:$4 sm:$0xff]  }
 0x31a   :  { %v1962_v9 = vpack.c.bf16 %v1960_v43, %v1960_v43 }
 0x31c   :  { %3120 = vmatprep.mubr.msk.bf16.mxu0 %vm2184_vm7, %v1962_v9  ;;  %v3539_v9 = vld [vmem:[#allocation8 + $0x274] ss:$8 sps:$4 sm:$0xff]  }
 0x31d   :  { %2429 = vmatmul.mubr.bf16.vlgmr.msra.gmra.mxu0 %v1961_v51 }
 0x33d   :  { %v1659_v0 = vpop.f32.mrf.mxu0  ;;  %v4525_v58 = vpop.f32.mrf.mxu1 }
 0x33e   :  { %v1812_v39 = vadd.f32 %v4508_v42, %v1659_v0  ;;  %v3501_v42 = vld [vmem:[#allocation8 + $0x240] ss:$8 sps:$4 sm:$0xff]   ;;  %v3542_v0 = vld [vmem:[#allocation8 + $0x264] ss:$8 sps:$4 sm:$0xff]  }
 0x33f   :  { %v1661_v61 = vpop.f32.mrf.mxu0  ;;  %v4527_v63 = vpop.f32.mrf.mxu1 }
 0x340   :  { %v1814_v14 = vadd.f32 %v4510_v46, %v1661_v61  ;;  %v3506_v46 = vld [vmem:[#allocation8 + $0x234] ss:$8 sps:$4 sm:$0xff]   ;;  %v3540_v61 = vld [vmem:[#allocation8 + $0x260] ss:$8 sps:$4 sm:$0xff]  }
 0x341   :  { %v1663_v1 = vpop.f32.mrf.mxu0  ;;  %v1902_v4 = vpop.f32.mrf.mxu1 }
 0x342   :  { %v3543_v4 = vld [vmem:[%s4606_s9 + $0x78] sm:$0xff]  }
 0x343   :  { %v1664_v3 = vpop.f32.mrf.mxu0  ;;  %v1903_v5 = vpop.f32.mrf.mxu1  ;;  %3169 = vmatprep.subr.bf16.mxu0 %v3543_v4 }
 0x344   :  { %v3546_v3 = vld [vmem:[%s4606_s9 + $0x30] sm:$0xff]   ;;  %v3547_v5 = vld [vmem:[%s4606_s9 + $0x68] sm:$0xff]  }
 0x369   :  { %v1855_v7 = vpop.f32.mrf.mxu0 }
 0x36a   :  { %v1862_v11 = vadd.f32 %v1855_v7, %v1812_v39  ;;  %v3548_v39 = vld [vmem:[%s4606_s9 + $0x28] sm:$0xff]   ;;  %v3549_v7 = vld [vmem:[%s4606_s9 + $0x60] sm:$0xff]  }
 0x36b   :  { %v1857_v17 = vpop.f32.mrf.mxu0 }
 0x36c   :  { %v1963_v56 = vadd.f32 %v4515_v10, %v1862_v11  ;;  %v1863_v41 = vadd.f32 %v1857_v17, %v1814_v14  ;;  %v3550_v14 = vld [vmem:[%s4606_s9 + $0x20] sm:$0xff]   ;;  %v3551_v11 = vld [vmem:[%s4606_s9 + $0x58] sm:$0xff]  }
 0x36d   :  { %v1859_v44 = vpop.f32.mrf.mxu0  ;;  %v3552_v17 = vld [vmem:[%s4606_s9 + $0x18] sm:$0xff]  }
 0x36e   :  { %v1964_v45 = vadd.f32 %v4519_v55, %v1863_v41  ;;  %v1965_v47 = vmax.f32 %v1963_v56, 0.0 }
 0x36f   :  { %v1860_v48 = vpop.f32.mrf.mxu0 }
 0x370   :  { %v1966_v50 = vmax.f32 %v1964_v45, 0.0  ;;  %v1967_v62 = vpack.c.bf16 %v1965_v47, %v1965_v47  ;;  %v3553_v47 = vld [vmem:[%s4606_s9 + $0x50] sm:$0xff]  }
 0x371   :  { %v3554_v48 = vld [vmem:[%s4606_s9 + $0x10] sm:$0xff]  }
 0x372   :  { %v1968_v52 = vpack.c.bf16 %v1966_v50, %v1966_v50  ;;  %v3555_v50 = vld [vmem:[%s4606_s9 + $0x48] sm:$0xff]  }
 0x374   :  { %3089 = vmatprep.mubr.msk.bf16.mxu1 %vm2184_vm7, %v1968_v52  ;;  %v3556_v52 = vld [vmem:[%s4606_s9 + $0x8] sm:$0xff]  }
 0x375   :  { %2231 = vmatmul.mubr.bf16.vlgmr.msra.gmra.mxu1 %v1967_v62  ;;  %v3558_v62 = vld [vmem:[%s4606_s9] sm:$0xff]  }
 0x376   :  { %2626 = vmatpush1.bf16.msra.mxu1 %v3498_v60  ;;  %v3557_v60 = vld [vmem:[%s4606_s9 + $0x40] sm:$0xff]  }
 0x377   :  { %2627 = vmatprep.subr.bf16.mxu1 %v3503_v2 }
 0x37a   :  { %2628 = vmatpush1.bf16.msra.mxu1 %v3501_v42 }
 0x37b   :  { %2629 = vmatprep.subr.bf16.mxu1 %v3506_v46 }
 0x37e   :  { %2630 = vmatpush1.bf16.msra.mxu1 %v3504_v6 }
 0x37f   :  { %2631 = vmatprep.subr.bf16.mxu1 %v3509_v13  ;;  %v2668_v13 = vld [vmem:[#allocation10] sm:$0x3] }
 0x382   :  { %2632 = vmatpush1.bf16.msra.mxu1 %v3507_v25 }
 0x383   :  { %2633 = vmatprep.subr.bf16.mxu1 %v3512_v8  ;;  %v2673_v8 = vrot.slane %v2668_v13, %v4712_v16  ;;  %v3152_v16 = vld [vmem:[%s4607_s10] ss:$0 sm:$0xff] }
 0x386   :  { %2634 = vmatpush1.bf16.msra.mxu1 %v3510_v15 }
 0x387   :  { %2635 = vmatprep.subr.bf16.mxu1 %v3515_v57 }
 0x38a   :  { %2636 = vmatpush1.bf16.msra.mxu1 %v3513_v20 }
 0x38b   :  { %2637 = vmatprep.subr.bf16.mxu1 %v3518_v31  ;;  %v2677_v31 = vrot.slane %v2668_v13, %v4713_v12 }
 0x38e   :  { %2638 = vmatpush1.bf16.msra.mxu1 %v3516_v21 }
 0x38f   :  { %2639 = vmatprep.subr.bf16.mxu1 %v3521_v22 }
 0x392   :  { %2640 = vmatpush1.bf16.msra.mxu1 %v3519_v19 }
 0x393   :  { %2643 = vmatprep.subr.bf16.mxu1 %v2623_v23 }
 0x395   :  { %v1939_v59 = vpop.f32.mrf.mxu0 }
 0x396   :  { %2644 = vmatpush2.bf16.msra.mxu1 %v2620_v53  ;;  %v1940_v43 = vadd.f32 %v1939_v59, %v4525_v58  ;;  %v3544_v58 = vld [vmem:[%s4606_s9 + $0x38] sm:$0xff]  }
 0x397   :  { %v1941_v33 = vpop.f32.mrf.mxu0  ;;  %2645 = vmatprep.subr.bf16.mxu1 %v3527_v26  ;;  %3170 = vmatpush3.bf16.msra.mxu0 %v3544_v58 }
 0x398   :  { %v1942_v29 = vadd.f32 %v1941_v33, %v4527_v63  ;;  %v1969_v51 = vadd.f32 %v4515_v10, %v1940_v43  ;;  %v3545_v10 = vld [vmem:[%s4606_s9 + $0x70] sm:$0xff]  }
 0x399   :  { %v1943_v30 = vpop.f32.mrf.mxu0  ;;  %3171 = vmatprep.subr.bf16.mxu0 %v3545_v10 }
 0x39a   :  { %v1970_v38 = vadd.f32 %v4519_v55, %v1942_v29  ;;  %2646 = vmatpush2.bf16.msra.mxu1 %v3525_v54  ;;  %v3537_v55 = vld [vmem:[#allocation8 + $0x270] ss:$8 sps:$4 sm:$0xff]   ;;  %v1971_v63 = vmax.f32 %v1969_v51, 0.0 }
 0x39b   :  { %v1944_v27 = vpop.f32.mrf.mxu0  ;;  %2647 = vmatprep.subr.bf16.mxu1 %v3530_v37  ;;  %3172 = vmatpush3.bf16.msra.mxu0 %v3546_v3 }
 0x39c   :  { %v1972_v49 = vmax.f32 %v1970_v38, 0.0  ;;  %v1973_v1 = vpack.c.bf16 %v1971_v63, %v1971_v63  ;;  %3173 = vmatprep.subr.bf16.mxu0 %v3547_v5 }
 0x39e   :  { %v1974_v36 = vpack.c.bf16 %v1972_v49, %v1972_v49  ;;  %2648 = vmatpush2.bf16.msra.mxu1 %v3528_v28 }
 0x39f   :  { %2649 = vmatprep.subr.bf16.mxu1 %v3533_v34  ;;  %3174 = vmatpush3.bf16.msra.mxu0 %v3548_v39 }
 0x3a0   :  { %3151 = vmatprep.mubr.msk.bf16.mxu1 %vm2184_vm7, %v1974_v36  ;;  %3175 = vmatprep.subr.bf16.mxu0 %v3549_v7 }
 0x3a2   :  { %2650 = vmatpush2.bf16.msra.mxu1 %v3531_v35 }
 0x3a3   :  { %2651 = vmatprep.subr.bf16.mxu1 %v3536_v32  ;;  %3176 = vmatpush3.bf16.msra.mxu0 %v3550_v14 }
 0x3a4   :  { %3177 = vmatprep.subr.bf16.mxu0 %v3551_v11 }
 0x3a6   :  { %2652 = vmatpush2.bf16.msra.mxu1 %v3534_v40 }
 0x3a7   :  { %2653 = vmatprep.subr.bf16.mxu1 %v3539_v9  ;;  %3178 = vmatpush3.bf16.msra.mxu0 %v3552_v17 }
 0x3a8   :  { %3179 = vmatprep.subr.bf16.mxu0 %v3553_v47 }
 0x3aa   :  { %2654 = vmatpush2.bf16.msra.mxu1 %v3537_v55 }
 0x3ab   :  { %2655 = vmatprep.subr.bf16.mxu1 %v3542_v0  ;;  %3180 = vmatpush3.bf16.msra.mxu0 %v3554_v48 }
 0x3ac   :  { %3181 = vmatprep.subr.bf16.mxu0 %v3555_v50 }
 0x3ae   :  { %2656 = vmatpush2.bf16.msra.mxu1 %v3540_v61 }
 0x3af   :  { %3182 = vmatpush3.bf16.msra.mxu0 %v3556_v52 }
 0x3b0   :  { %3183 = vmatprep.subr.bf16.mxu0 %v3557_v60 }
 0x3b1   :  { %2658 = vmatmul.mubr.bf16.vlgmr.msra.gmra.mxu1 %v1973_v1 }
 0x3b3   :  { %3184 = vmatpush3.bf16.msra.mxu0 %v3558_v62 }
 0x3dd   :  { %v2430_v56 = vpop.f32.mrf.mxu0 }
 0x3df   :  { %v2432_v41 = vpop.f32.mrf.mxu0 }
 0x3e1   :  { %v2434_v44 = vpop.f32.mrf.mxu0 }
 0x3e3   :  { %v2435_v45 = vpop.f32.mrf.mxu0 }
 0x435   :  { %v2232_v2 = vpop.f32.mrf.mxu1 }
 0x436   :  { %v2431_v25 = vadd.f32 %v2430_v56, %v2232_v2 }
 0x437   :  { %v2234_v42 = vpop.f32.mrf.mxu1 }
 0x438   :  { %v2433_v57 = vadd.f32 %v2432_v41, %v2234_v42 }
 0x439   :  { %v2236_v46 = vpop.f32.mrf.mxu1 }
 0x43b   :  { %v2237_v6 = vpop.f32.mrf.mxu1 }
 0x471   :  { %v2659_v15 = vpop.f32.mrf.mxu1 }
 0x472   :  { %v2666_v20 = vadd.f32 %v2659_v15, %v2431_v25 }
 0x473   :  { %v2661_v21 = vpop.f32.mrf.mxu1 }
 0x474   :  { %v2680_v22 = vadd.f32 %v2673_v8, %v2666_v20  ;;  %v2667_v18 = vadd.f32 %v2661_v21, %v2433_v57 }
 0x475   :  { %v2663_v19 = vpop.f32.mrf.mxu1 }
 0x476   :  { %v2681_v24 = vadd.f32 %v2677_v31, %v2667_v18  ;;  %v2682_v23 = vmax.f32 %v2680_v22, 0.0 }
 0x477   :  { %v2664_v53 = vpop.f32.mrf.mxu1 }
 0x478   :  { %v2683_v26 = vmax.f32 %v2681_v24, 0.0  ;;  %v2684_v54 = vpack.c.bf16 %v2682_v23, %v2682_v23 }
 0x47a   :  { %v2685_v59 = vpack.c.bf16 %v2683_v26, %v2683_v26 }
 0x47c   :  { %2853 = vmatprep.mubr.bf16.mxu0 %v2685_v59 }
 0x47d   :  { %2854 = vmatmul.mubr.bf16.vlgmr.msra.gmra.mxu0 %v2684_v54 }
 0x53d   :  { %v3185_v33 = vpop.f32.mrf.mxu0 }
 0x53f   :  { %v3186_v37 = vpop.f32.mrf.mxu0 }
 0x540   :  { %v3187_v12 = vadd.f32 %v3186_v37, %v3185_v33 }
 0x541   :  { %v3188_v29 = vpop.f32.mrf.mxu0 }
 0x542   :  { %v2856_v30 = vadd.f32 %v3187_v12, %v3152_v16 }
 0x543   :  { %v3189_v38 = vpop.f32.mrf.mxu0 }
 0x544   :  { %2861 = vst [vmem:[#allocation11] sm:$0xff] %v2856_v30 }
 0x545   :  { %3670 = shalt.err (!%p3667_p1)
}
 0x546   :  { %2871 = dma.vmem_to_hbm [thread:$0]  %s2869_s26, 128, %s4608_s11, [#allocation4]  }
 0x547   :  { %3685 = dma.done.wait [#allocation4], 128  }
 0x548   :  { %3686 = vsyncadd [#allocation4], 4294967168 }
 0x549   :  { %2875 = vsyncpa [#allocation3], 1 }
 0x54a   :  { %2876 = vsyncpa [#allocation6], 1 }
 0x54b   :  { %2877 = vsyncpa [#allocation9], 1 }
 0x54c   :  { %2878 = vsyncpa [#allocation4], 1 }

</bundles_post_ra>
